<compile_context>
chip_gen: v7x
topology: tpu7x:2x2x1
jax: 0.10.0
libtpu: 0.0.40
codegen_flags: <defaults>
</compile_context>

<pallas_src>
import functools

import jax
import jax.numpy as jnp
from jax.experimental import pallas as pl
from jax.experimental.pallas import tpu as pltpu


# ----------------------------------------------------------------------------
# Fused kernel: conv1-3 (+BN+ReLU, conv3 epilogue deferred) -> running max-pool
#               -> fc1-3 head (+identity) on the last N tile.
# ----------------------------------------------------------------------------
def _stn_kernel(x_ref,
                w1_ref, b1_ref, w2_ref, b2_ref, w3_ref, b3_ref,
                w4_ref, b4_ref, w5_ref, b5_ref, w6_ref, b6_ref,
                o_ref, acc_ref,
                *, tb, tn, k, n_points, partial_tail):
    n = pl.program_id(1)

    x = x_ref[...]                                       # (tb, tn, k), f32

    if partial_tail:
        # Tail tile of a non-divisor N: replace out-of-range rows with row 0 of
        # the same batch slice (max-invariant, keeps garbage/NaN off the MXU).
        row = jax.lax.broadcasted_iota(jnp.int32, (1, tn, 1), 1)
        x = jnp.where(row < (n_points - n * tn), x, x[:, 0:1, :])

    def mm(h, w_ref):
        # bf16 MXU matmul, f32 accumulation.
        return jnp.dot(h.astype(jnp.bfloat16), w_ref[...],
                       preferred_element_type=jnp.float32)

    h = x.reshape(tb * tn, k)                            # free leading-dim merge
    # conv1 / conv2: BN scale pre-folded into weights -> bias + ReLU epilogue.
    h = jnp.maximum(mm(h, w1_ref) + b1_ref[...], 0.0)    # (tb*tn, 64)
    h = jnp.maximum(mm(h, w2_ref) + b2_ref[...], 0.0)    # (tb*tn, 128)
    # conv3: scale folded into w3; bias + ReLU deferred past the max-pool.
    h = mm(h, w3_ref)                                    # (tb*tn, 1024)

    tile_max = jnp.max(h.reshape(tb, tn, 1024), axis=1)  # (tb, 1024)

    @pl.when(n == 0)
    def _init():
        acc_ref[...] = tile_max

    @pl.when(n != 0)
    def _accumulate():
        acc_ref[...] = jnp.maximum(acc_ref[...], tile_max)

    # fc head, fused: runs once per batch block on the last N tile.
    @pl.when(n == pl.num_programs(1) - 1)
    def _head():
        g = jnp.maximum(acc_ref[...] + b3_ref[...], 0.0)      # deferred conv3 bias+ReLU
        g = jnp.maximum(mm(g, w4_ref) + b4_ref[...], 0.0)     # (tb, 512)
        g = jnp.maximum(mm(g, w5_ref) + b5_ref[...], 0.0)     # (tb, 256)
        # fc3: flattened identity already folded into b6.
        o_ref[...] = mm(g, w6_ref) + b6_ref[...]              # (tb, k*k)


# ----------------------------------------------------------------------------
# Tiling helpers
# ----------------------------------------------------------------------------
def _choose_tile_b(B, max_tb=8):
    """Largest divisor of B that is <= max_tb (batch rows per grid step)."""
    for tb in range(min(B, max_tb), 0, -1):
        if B % tb == 0:
            return tb
    return 1


def _choose_tile_n(N, max_tn):
    """N tile <= max_tn. Prefers an exact divisor (no tail mask); otherwise a
    multiple-of-8 tile with a cdiv grid + in-kernel tail masking."""
    if N <= max_tn:
        return N
    cap = max(8, (max_tn // 8) * 8)
    for tn in range(cap, max(cap // 2, 8) - 1, -8):
        if N % tn == 0:
            return tn
    return cap


# ----------------------------------------------------------------------------
# One-time parameter prep: fold BN scale into transposed bf16 weights, fold the
# flattened identity into the fc3 bias.
# ----------------------------------------------------------------------------
def prepare_params(params, k):
    (w1, s1, b1, w2, s2, b2, w3, s3, b3,
     w4, s4, b4, w5, s5, b5, w6, b6) = params

    def fold(w, s):  # w: (Cout, Cin), s: (1, Cout) -> (Cin, Cout) bf16
        return (w.T * s).astype(jnp.bfloat16)

    b6_eff = b6 + jnp.eye(k, dtype=jnp.float32).reshape(1, k * k)
    return (fold(w1, s1), b1, fold(w2, s2), b2, fold(w3, s3), b3,
            fold(w4, s4), b4, fold(w5, s5), b5,
            w6.T.astype(jnp.bfloat16), b6_eff)


# ----------------------------------------------------------------------------
# Wrapper
# ----------------------------------------------------------------------------
def stnkd_forward(x_bnk, prepped_params, *, max_rows_per_tile=1024):
    """x_bnk: (B, N, k) float32, channels-last. Returns (B, k, k) float32."""
    B, N, k = x_bnk.shape

    TB = _choose_tile_b(B)
    TN = _choose_tile_n(N, max(8, max_rows_per_tile // TB))
    n_tiles = pl.cdiv(N, TN)
    partial_tail = (N % TN) != 0

    kernel = functools.partial(_stn_kernel, tb=TB, tn=TN, k=k,
                               n_points=N, partial_tail=partial_tail)

    def const_spec(arr):
        # Weight/bias blocks: whole array, constant index across the grid.
        return pl.BlockSpec(arr.shape, lambda b, n: (0,) * arr.ndim)

    out_flat = pl.pallas_call(
        kernel,
        out_shape=jax.ShapeDtypeStruct((B, k * k), jnp.float32),
        grid_spec=pltpu.PrefetchScalarGridSpec(
            num_scalar_prefetch=0,
            grid=(B // TB, n_tiles),                       # reduction (N) axis last
            in_specs=[pl.BlockSpec((TB, TN, k), lambda b, n: (b, n, 0))]
                     + [const_spec(a) for a in prepped_params],
            out_specs=pl.BlockSpec((TB, k * k), lambda b, n: (b, 0)),
            scratch_shapes=[pltpu.VMEM((TB, 1024), jnp.float32)],
        ),
        compiler_params=pltpu.CompilerParams(
            dimension_semantics=("parallel", "arbitrary"),
            vmem_limit_bytes=32 * 1024 * 1024),
    )(x_bnk, *prepped_params)

    return out_flat.reshape(B, k, k)


# ----------------------------------------------------------------------------
# Parameter construction (shapes match STNkd.__init__, eval-mode BN folded)
# ----------------------------------------------------------------------------
def make_params(key, k):
    eps = 1e-5
    dims = [(64, k), (128, 64), (1024, 128),    # conv1..conv3 (kernel_size=1)
            (512, 1024), (256, 512)]            # fc1, fc2
    keys = jax.random.split(key, 64)
    ki = iter(range(64))

    params = []
    for (cout, cin) in dims:
        w = jax.random.normal(keys[next(ki)], (cout, cin), jnp.float32) * 0.05
        layer_bias = jax.random.normal(keys[next(ki)], (cout,), jnp.float32) * 0.05
        gamma = 1.0 + 0.1 * jax.random.normal(keys[next(ki)], (cout,), jnp.float32)
        beta = 0.1 * jax.random.normal(keys[next(ki)], (cout,), jnp.float32)
        run_mean = 0.1 * jax.random.normal(keys[next(ki)], (cout,), jnp.float32)
        run_var = 1.0 + 0.1 * jax.random.uniform(keys[next(ki)], (cout,), jnp.float32)
        # eval-mode BN: bn(z) = (z - mean) * gamma / sqrt(var + eps) + beta
        scale = gamma / jnp.sqrt(run_var + eps)
        bias = (layer_bias - run_mean) * scale + beta
        params += [w, scale.reshape(1, cout), bias.reshape(1, cout)]

    # fc3: (k*k, 256), no BN
    w6 = jax.random.normal(keys[next(ki)], (k * k, 256), jnp.float32) * 0.05
    b6 = jax.random.normal(keys[next(ki)], (k * k,), jnp.float32) * 0.05
    params += [w6, b6.reshape(1, k * k)]
    return tuple(params)


# ----------------------------------------------------------------------------
# Pure-JAX reference (mirrors the kernel's scale-fold / bf16-matmul math)
# ----------------------------------------------------------------------------
def ref_forward(x_bnk, params):
    (w1, s1, b1, w2, s2, b2, w3, s3, b3,
     w4, s4, b4, w5, s5, b5, w6, b6) = params
    k = int(round(w6.shape[0] ** 0.5))
    bf16 = jnp.bfloat16

    def layer(h, w, s, b, relu=True):
        wt = (w.T * s).astype(bf16) if s is not None else w.T.astype(bf16)
        z = jnp.dot(h.astype(bf16), wt, preferred_element_type=jnp.float32) + b
        return jnp.maximum(z, 0.0) if relu else z

    h = layer(x_bnk, w1, s1, b1)
    h = layer(h, w2, s2, b2)
    h = layer(h, w3, s3, b3)
    g = jnp.max(h, axis=1)                                  # (B, 1024)
    g = layer(g, w4, s4, b4)
    g = layer(g, w5, s5, b5)
    out = layer(g, w6, None, b6, relu=False)
    out = out + jnp.eye(k, dtype=jnp.float32).reshape(1, k * k)
    return out.reshape(-1, k, k)


if __name__ == "__main__":
    B, k, N = 2, 16, 32                        # batch, transform dim, num points
    key = jax.random.PRNGKey(0)
    kx, kp = jax.random.split(key)

    # PyTorch-layout input (B, k, N), transposed to kernel layout (B, N, k).
    x_torch_layout = jax.random.normal(kx, (B, k, N), jnp.float32)
    x_kernel = jnp.transpose(x_torch_layout, (0, 2, 1))

    params = make_params(kp, k)
    prepped = prepare_params(params, k)        # one-time weight prep (fold + cast)

    out = stnkd_forward(x_kernel, prepped)
    out = jax.block_until_ready(out)

    ref = ref_forward(x_kernel, params)
    assert out.shape == (B, k, k)
    max_err = float(jnp.max(jnp.abs(out - ref)))
    assert jnp.allclose(out, ref, atol=1e-2, rtol=1e-2), max_err

    print("KERNEL_OK")
</pallas_src>

<mosaic_0001>
module attributes {stable_mosaic.version = 11 : i64} {
  func.func @_stn_kernel(%arg0: i32, %arg1: i32, %arg2: memref<2x32x16xf32, #tpu.memory_space<vmem>>, %arg3: memref<16x64xbf16, #tpu.memory_space<vmem>>, %arg4: memref<1x64xf32, #tpu.memory_space<vmem>>, %arg5: memref<64x128xbf16, #tpu.memory_space<vmem>>, %arg6: memref<1x128xf32, #tpu.memory_space<vmem>>, %arg7: memref<128x1024xbf16, #tpu.memory_space<vmem>>, %arg8: memref<1x1024xf32, #tpu.memory_space<vmem>>, %arg9: memref<1024x512xbf16, #tpu.memory_space<vmem>>, %arg10: memref<1x512xf32, #tpu.memory_space<vmem>>, %arg11: memref<512x256xbf16, #tpu.memory_space<vmem>>, %arg12: memref<1x256xf32, #tpu.memory_space<vmem>>, %arg13: memref<256x256xbf16, #tpu.memory_space<vmem>>, %arg14: memref<1x256xf32, #tpu.memory_space<vmem>>, %arg15: memref<2x256xf32, #tpu.memory_space<vmem>>, %arg16: memref<2x1024xf32, #tpu.memory_space<vmem>>) attributes {dimension_semantics = [#tpu.dimension_semantics<parallel>, #tpu.dimension_semantics<arbitrary>], iteration_bounds = array<i64: 1, 1>, scalar_prefetch = 0 : i64, scratch_operands = 1 : i64, tpu.core_type = #tpu.core_type<tc>, window_params = [{transform_indices = @transform_0, window_bounds = array<i64: 2, 32, 16>}, {pipeline_mode = #tpu.pipeline_mode<synchronous>, transform_indices = @transform_1, window_bounds = array<i64: 16, 64>}, {pipeline_mode = #tpu.pipeline_mode<synchronous>, transform_indices = @transform_2, window_bounds = array<i64: 1, 64>}, {pipeline_mode = #tpu.pipeline_mode<synchronous>, transform_indices = @transform_3, window_bounds = array<i64: 64, 128>}, {pipeline_mode = #tpu.pipeline_mode<synchronous>, transform_indices = @transform_4, window_bounds = array<i64: 1, 128>}, {pipeline_mode = #tpu.pipeline_mode<synchronous>, transform_indices = @transform_5, window_bounds = array<i64: 128, 1024>}, {pipeline_mode = #tpu.pipeline_mode<synchronous>, transform_indices = @transform_6, window_bounds = array<i64: 1, 1024>}, {pipeline_mode = #tpu.pipeline_mode<synchronous>, transform_indices = @transform_7, window_bounds = array<i64: 1024, 512>}, {pipeline_mode = #tpu.pipeline_mode<synchronous>, transform_indices = @transform_8, window_bounds = array<i64: 1, 512>}, {pipeline_mode = #tpu.pipeline_mode<synchronous>, transform_indices = @transform_9, window_bounds = array<i64: 512, 256>}, {pipeline_mode = #tpu.pipeline_mode<synchronous>, transform_indices = @transform_10, window_bounds = array<i64: 1, 256>}, {pipeline_mode = #tpu.pipeline_mode<synchronous>, transform_indices = @transform_11, window_bounds = array<i64: 256, 256>}, {pipeline_mode = #tpu.pipeline_mode<synchronous>, transform_indices = @transform_12, window_bounds = array<i64: 1, 256>}, {transform_indices = @transform_13, window_bounds = array<i64: 2, 256>}]} {
    %c0 = arith.constant 0 : index
    %c0_0 = arith.constant 0 : index
    %c0_1 = arith.constant 0 : index
    %0 = vector.load %arg2[%c0, %c0_0, %c0_1] : memref<2x32x16xf32, #tpu.memory_space<vmem>>, vector<2x32x16xf32>
    %1 = vector.shape_cast %0 : vector<2x32x16xf32> to vector<64x16xf32>
    %2 = arith.truncf %1 : vector<64x16xf32> to vector<64x16xbf16>
    %c0_2 = arith.constant 0 : index
    %c0_3 = arith.constant 0 : index
    %3 = vector.load %arg3[%c0_2, %c0_3] : memref<16x64xbf16, #tpu.memory_space<vmem>>, vector<16x64xbf16>
    %cst = arith.constant dense<0.000000e+00> : vector<64x64xf32>
    %4 = tpu.matmul %2, %3, %cst {dimension_numbers = #tpu.dot_dimension_numbers<[1], [0], [0], [1], [0, 0, 1, 1], [], []>} : vector<64x16xbf16>, vector<16x64xbf16>, vector<64x64xf32> -> vector<64x64xf32>
    %c0_4 = arith.constant 0 : index
    %c0_5 = arith.constant 0 : index
    %5 = vector.load %arg4[%c0_4, %c0_5] : memref<1x64xf32, #tpu.memory_space<vmem>>, vector<1x64xf32>
    %6 = vector.broadcast %5 : vector<1x64xf32> to vector<64x64xf32>
    %7 = arith.addf %4, %6 : vector<64x64xf32>
    %cst_6 = arith.constant 0.000000e+00 : f32
    %8 = vector.broadcast %cst_6 : f32 to vector<64x64xf32>
    %9 = arith.maximumf %7, %8 : vector<64x64xf32>
    %10 = arith.truncf %9 : vector<64x64xf32> to vector<64x64xbf16>
    %c0_7 = arith.constant 0 : index
    %c0_8 = arith.constant 0 : index
    %11 = vector.load %arg5[%c0_7, %c0_8] : memref<64x128xbf16, #tpu.memory_space<vmem>>, vector<64x128xbf16>
    %cst_9 = arith.constant dense<0.000000e+00> : vector<64x128xf32>
    %12 = tpu.matmul %10, %11, %cst_9 {dimension_numbers = #tpu.dot_dimension_numbers<[1], [0], [0], [1], [0, 0, 1, 1], [], []>} : vector<64x64xbf16>, vector<64x128xbf16>, vector<64x128xf32> -> vector<64x128xf32>
    %c0_10 = arith.constant 0 : index
    %c0_11 = arith.constant 0 : index
    %13 = vector.load %arg6[%c0_10, %c0_11] : memref<1x128xf32, #tpu.memory_space<vmem>>, vector<1x128xf32>
    %14 = vector.broadcast %13 : vector<1x128xf32> to vector<64x128xf32>
    %15 = arith.addf %12, %14 : vector<64x128xf32>
    %cst_12 = arith.constant 0.000000e+00 : f32
    %16 = vector.broadcast %cst_12 : f32 to vector<64x128xf32>
    %17 = arith.maximumf %15, %16 : vector<64x128xf32>
    %18 = arith.truncf %17 : vector<64x128xf32> to vector<64x128xbf16>
    %c0_13 = arith.constant 0 : index
    %c0_14 = arith.constant 0 : index
    %19 = vector.load %arg7[%c0_13, %c0_14] : memref<128x1024xbf16, #tpu.memory_space<vmem>>, vector<128x1024xbf16>
    %cst_15 = arith.constant dense<0.000000e+00> : vector<64x1024xf32>
    %20 = tpu.matmul %18, %19, %cst_15 {dimension_numbers = #tpu.dot_dimension_numbers<[1], [0], [0], [1], [0, 0, 1, 1], [], []>} : vector<64x128xbf16>, vector<128x1024xbf16>, vector<64x1024xf32> -> vector<64x1024xf32>
    %21 = vector.shape_cast %20 : vector<64x1024xf32> to vector<2x32x1024xf32>
    %cst_16 = arith.constant dense<0xFF800000> : vector<2x1024xf32>
    %22 = vector.multi_reduction <maximumf>, %21, %cst_16 [1] : vector<2x32x1024xf32> to vector<2x1024xf32>
    %c0_i32 = arith.constant 0 : i32
    %23 = arith.cmpi eq, %arg1, %c0_i32 : i32
    %24 = arith.extui %23 : i1 to i32
    %c0_i32_17 = arith.constant 0 : i32
    %25 = arith.cmpi ne, %24, %c0_i32_17 : i32
    scf.if %25 {
      %c0_22 = arith.constant 0 : index
      %c0_23 = arith.constant 0 : index
      %32 = vector.load %arg16[%c0_22, %c0_23] : memref<2x1024xf32, #tpu.memory_space<vmem>>, vector<2x1024xf32>
      tpu.vector_store %arg16[%c0_22, %c0_23], %22 {strides = array<i32>} : memref<2x1024xf32, #tpu.memory_space<vmem>>, vector<2x1024xf32>,
    } else {
    }
    %c0_i32_18 = arith.constant 0 : i32
    %26 = arith.cmpi ne, %arg1, %c0_i32_18 : i32
    %27 = arith.extui %26 : i1 to i32
    %c0_i32_19 = arith.constant 0 : i32
    %28 = arith.cmpi ne, %27, %c0_i32_19 : i32
    scf.if %28 {
      %c0_22 = arith.constant 0 : index
      %c0_23 = arith.constant 0 : index
      %32 = vector.load %arg16[%c0_22, %c0_23] : memref<2x1024xf32, #tpu.memory_space<vmem>>, vector<2x1024xf32>
      %33 = arith.maximumf %32, %22 : vector<2x1024xf32>
      %c0_24 = arith.constant 0 : index
      %c0_25 = arith.constant 0 : index
      %34 = vector.load %arg16[%c0_24, %c0_25] : memref<2x1024xf32, #tpu.memory_space<vmem>>, vector<2x1024xf32>
      tpu.vector_store %arg16[%c0_24, %c0_25], %33 {strides = array<i32>} : memref<2x1024xf32, #tpu.memory_space<vmem>>, vector<2x1024xf32>,
    } else {
    }
    %c0_i32_20 = arith.constant 0 : i32
    %29 = arith.cmpi eq, %arg1, %c0_i32_20 : i32
    %30 = arith.extui %29 : i1 to i32
    %c0_i32_21 = arith.constant 0 : i32
    %31 = arith.cmpi ne, %30, %c0_i32_21 : i32
    scf.if %31 {
      %c0_22 = arith.constant 0 : index
      %c0_23 = arith.constant 0 : index
      %32 = vector.load %arg16[%c0_22, %c0_23] : memref<2x1024xf32, #tpu.memory_space<vmem>>, vector<2x1024xf32>
      %c0_24 = arith.constant 0 : index
      %c0_25 = arith.constant 0 : index
      %33 = vector.load %arg8[%c0_24, %c0_25] : memref<1x1024xf32, #tpu.memory_space<vmem>>, vector<1x1024xf32>
      %34 = vector.broadcast %33 : vector<1x1024xf32> to vector<2x1024xf32>
      %35 = arith.addf %32, %34 : vector<2x1024xf32>
      %cst_26 = arith.constant 0.000000e+00 : f32
      %36 = vector.broadcast %cst_26 : f32 to vector<2x1024xf32>
      %37 = arith.maximumf %35, %36 : vector<2x1024xf32>
      %38 = arith.truncf %37 : vector<2x1024xf32> to vector<2x1024xbf16>
      %c0_27 = arith.constant 0 : index
      %c0_28 = arith.constant 0 : index
      %39 = vector.load %arg9[%c0_27, %c0_28] : memref<1024x512xbf16, #tpu.memory_space<vmem>>, vector<1024x512xbf16>
      %cst_29 = arith.constant dense<0.000000e+00> : vector<2x512xf32>
      %40 = tpu.matmul %38, %39, %cst_29 {dimension_numbers = #tpu.dot_dimension_numbers<[1], [0], [0], [1], [0, 0, 1, 1], [], []>} : vector<2x1024xbf16>, vector<1024x512xbf16>, vector<2x512xf32> -> vector<2x512xf32>
      %c0_30 = arith.constant 0 : index
      %c0_31 = arith.constant 0 : index
      %41 = vector.load %arg10[%c0_30, %c0_31] : memref<1x512xf32, #tpu.memory_space<vmem>>, vector<1x512xf32>
      %42 = vector.broadcast %41 : vector<1x512xf32> to vector<2x512xf32>
      %43 = arith.addf %40, %42 : vector<2x512xf32>
      %cst_32 = arith.constant 0.000000e+00 : f32
      %44 = vector.broadcast %cst_32 : f32 to vector<2x512xf32>
      %45 = arith.maximumf %43, %44 : vector<2x512xf32>
      %46 = arith.truncf %45 : vector<2x512xf32> to vector<2x512xbf16>
      %c0_33 = arith.constant 0 : index
      %c0_34 = arith.constant 0 : index
      %47 = vector.load %arg11[%c0_33, %c0_34] : memref<512x256xbf16, #tpu.memory_space<vmem>>, vector<512x256xbf16>
      %cst_35 = arith.constant dense<0.000000e+00> : vector<2x256xf32>
      %48 = tpu.matmul %46, %47, %cst_35 {dimension_numbers = #tpu.dot_dimension_numbers<[1], [0], [0], [1], [0, 0, 1, 1], [], []>} : vector<2x512xbf16>, vector<512x256xbf16>, vector<2x256xf32> -> vector<2x256xf32>
      %c0_36 = arith.constant 0 : index
      %c0_37 = arith.constant 0 : index
      %49 = vector.load %arg12[%c0_36, %c0_37] : memref<1x256xf32, #tpu.memory_space<vmem>>, vector<1x256xf32>
      %50 = vector.broadcast %49 : vector<1x256xf32> to vector<2x256xf32>
      %51 = arith.addf %48, %50 : vector<2x256xf32>
      %cst_38 = arith.constant 0.000000e+00 : f32
      %52 = vector.broadcast %cst_38 : f32 to vector<2x256xf32>
      %53 = arith.maximumf %51, %52 : vector<2x256xf32>
      %54 = arith.truncf %53 : vector<2x256xf32> to vector<2x256xbf16>
      %c0_39 = arith.constant 0 : index
      %c0_40 = arith.constant 0 : index
      %55 = vector.load %arg13[%c0_39, %c0_40] : memref<256x256xbf16, #tpu.memory_space<vmem>>, vector<256x256xbf16>
      %cst_41 = arith.constant dense<0.000000e+00> : vector<2x256xf32>
      %56 = tpu.matmul %54, %55, %cst_41 {dimension_numbers = #tpu.dot_dimension_numbers<[1], [0], [0], [1], [0, 0, 1, 1], [], []>} : vector<2x256xbf16>, vector<256x256xbf16>, vector<2x256xf32> -> vector<2x256xf32>
      %c0_42 = arith.constant 0 : index
      %c0_43 = arith.constant 0 : index
      %57 = vector.load %arg14[%c0_42, %c0_43] : memref<1x256xf32, #tpu.memory_space<vmem>>, vector<1x256xf32>
      %58 = vector.broadcast %57 : vector<1x256xf32> to vector<2x256xf32>
      %59 = arith.addf %56, %58 : vector<2x256xf32>
      %c0_44 = arith.constant 0 : index
      %c0_45 = arith.constant 0 : index
      %60 = vector.load %arg15[%c0_44, %c0_45] : memref<2x256xf32, #tpu.memory_space<vmem>>, vector<2x256xf32>
      tpu.vector_store %arg15[%c0_44, %c0_45], %59 {strides = array<i32>} : memref<2x256xf32, #tpu.memory_space<vmem>>, vector<2x256xf32>,
    } else {
    }
    return
  }
  func.func @transform_0(%arg0: i32, %arg1: i32) -> (i32, i32, i32) {
    %c0_i32 = arith.constant 0 : i32
    %c0_i32_0 = arith.constant 0 : i32
    return %arg0, %arg1, %c0_i32 : i32, i32, i32
  }
  func.func @transform_1(%arg0: i32, %arg1: i32) -> (i32, i32) {
    %c0_i32 = arith.constant 0 : i32
    %c0_i32_0 = arith.constant 0 : i32
    %c0_i32_1 = arith.constant 0 : i32
    return %c0_i32, %c0_i32_0 : i32, i32
  }
  func.func @transform_2(%arg0: i32, %arg1: i32) -> (i32, i32) {
    %c0_i32 = arith.constant 0 : i32
    %c0_i32_0 = arith.constant 0 : i32
    %c0_i32_1 = arith.constant 0 : i32
    return %c0_i32, %c0_i32_0 : i32, i32
  }
  func.func @transform_3(%arg0: i32, %arg1: i32) -> (i32, i32) {
    %c0_i32 = arith.constant 0 : i32
    %c0_i32_0 = arith.constant 0 : i32
    %c0_i32_1 = arith.constant 0 : i32
    return %c0_i32, %c0_i32_0 : i32, i32
  }
  func.func @transform_4(%arg0: i32, %arg1: i32) -> (i32, i32) {
    %c0_i32 = arith.constant 0 : i32
    %c0_i32_0 = arith.constant 0 : i32
    %c0_i32_1 = arith.constant 0 : i32
    return %c0_i32, %c0_i32_0 : i32, i32
  }
  func.func @transform_5(%arg0: i32, %arg1: i32) -> (i32, i32) {
    %c0_i32 = arith.constant 0 : i32
    %c0_i32_0 = arith.constant 0 : i32
    %c0_i32_1 = arith.constant 0 : i32
    return %c0_i32, %c0_i32_0 : i32, i32
  }
  func.func @transform_6(%arg0: i32, %arg1: i32) -> (i32, i32) {
    %c0_i32 = arith.constant 0 : i32
    %c0_i32_0 = arith.constant 0 : i32
    %c0_i32_1 = arith.constant 0 : i32
    return %c0_i32, %c0_i32_0 : i32, i32
  }
  func.func @transform_7(%arg0: i32, %arg1: i32) -> (i32, i32) {
    %c0_i32 = arith.constant 0 : i32
    %c0_i32_0 = arith.constant 0 : i32
    %c0_i32_1 = arith.constant 0 : i32
    return %c0_i32, %c0_i32_0 : i32, i32
  }
  func.func @transform_8(%arg0: i32, %arg1: i32) -> (i32, i32) {
    %c0_i32 = arith.constant 0 : i32
    %c0_i32_0 = arith.constant 0 : i32
    %c0_i32_1 = arith.constant 0 : i32
    return %c0_i32, %c0_i32_0 : i32, i32
  }
  func.func @transform_9(%arg0: i32, %arg1: i32) -> (i32, i32) {
    %c0_i32 = arith.constant 0 : i32
    %c0_i32_0 = arith.constant 0 : i32
    %c0_i32_1 = arith.constant 0 : i32
    return %c0_i32, %c0_i32_0 : i32, i32
  }
  func.func @transform_10(%arg0: i32, %arg1: i32) -> (i32, i32) {
    %c0_i32 = arith.constant 0 : i32
    %c0_i32_0 = arith.constant 0 : i32
    %c0_i32_1 = arith.constant 0 : i32
    return %c0_i32, %c0_i32_0 : i32, i32
  }
  func.func @transform_11(%arg0: i32, %arg1: i32) -> (i32, i32) {
    %c0_i32 = arith.constant 0 : i32
    %c0_i32_0 = arith.constant 0 : i32
    %c0_i32_1 = arith.constant 0 : i32
    return %c0_i32, %c0_i32_0 : i32, i32
  }
  func.func @transform_12(%arg0: i32, %arg1: i32) -> (i32, i32) {
    %c0_i32 = arith.constant 0 : i32
    %c0_i32_0 = arith.constant 0 : i32
    %c0_i32_1 = arith.constant 0 : i32
    return %c0_i32, %c0_i32_0 : i32, i32
  }
  func.func @transform_13(%arg0: i32, %arg1: i32) -> (i32, i32) {
    %c0_i32 = arith.constant 0 : i32
    %c0_i32_0 = arith.constant 0 : i32
    return %arg0, %c0_i32 : i32, i32
  }
}

</mosaic_0001>

<bundles_post_ra>
// kernel: tpu_custom_call.1
= control target key start
LH: loop header
LB: loop body
LE: loop exit
PB: predicated region body
PF: predicated region fallthrough
CT: control target
= control target key end

     0   :  { %18 = vsyncpa [#allocation4], 0  ;;  %s5748_s0 = inlined_call_operand.vmem [shape: f32[2,32,16], index: 0, kind: input, shape index: {}]   ;;  %s5749_s1 = inlined_call_operand.vmem [shape: bf16[16,64], index: 1, kind: input, shape index: {}]   ;;  %s5750_s2 = inlined_call_operand.vmem [shape: f32[1,64], index: 2, kind: input, shape index: {}]   ;;  %s5751_s3 = inlined_call_operand.vmem [shape: bf16[64,128], index: 3, kind: input, shape index: {}]   ;;  %s5752_s4 = inlined_call_operand.vmem [shape: f32[1,128], index: 4, kind: input, shape index: {}]   ;;  %s5753_s5 = inlined_call_operand.hbm [shape: bf16[128,1024], index: 5, kind: input, shape index: {}]   ;;  %s5754_s6 = inlined_call_operand.vmem [shape: f32[1,1024], index: 6, kind: input, shape index: {}]   ;;  %s5755_s7 = inlined_call_operand.hbm [shape: bf16[1024,512], index: 7, kind: input, shape index: {}]   ;;  %s5756_s8 = inlined_call_operand.vmem [shape: f32[1,512], index: 8, kind: input, shape index: {}]   ;;  %s5757_s9 = inlined_call_operand.hbm [shape: bf16[512,256], index: 9, kind: input, shape index: {}]   ;;  %s5758_s10 = inlined_call_operand.vmem [shape: f32[1,256], index: 10, kind: input, shape index: {}]   ;;  %s5759_s11 = inlined_call_operand.hbm [shape: bf16[256,256], index: 11, kind: input, shape index: {}]   ;;  %s5760_s12 = inlined_call_operand.vmem [shape: f32[1,256], index: 12, kind: input, shape index: {}]   ;;  %s5761_s13 = inlined_call_operand.hbm [shape: f32[2,256], index: 13, kind: output, shape index: {}]  }
   0x1   :  { %19 = vsyncpa [#allocation7], 0 }
   0x2   :  { %20 = vsyncpa [#allocation10], 0 }
   0x3   :  { %21 = vsyncpa [#allocation5], 0  ;;  %s5345_s25 = smov [#allocation6]   ;;  %s5227_s29 = scalar_lea.hbm %s5755_s7, 32768 }
   0x4   :  { %s51_s26 = sshll.u32 %s5345_s25, 4  ;;  %p5228_p0 = scmp.ne.s32.totalorder %s5755_s7, %s5227_s29  ;;  %s52_s26 = int_to_ptr.vmem [resolvable:$true] %s51_s26 }
   0x5   :  { %p5231_p1 = scmp.lt.u32.totalorder %s5227_s29, %s5755_s7 }
   0x7   :  { %p5233_p2 = pnand %p5231_p1, %p5228_p0 }
   0x9   :  { %5236 = shalt.err (!%p5233_p2)
}
   0xa   :  { %s5237_s17 = scalar_lea.vmem %s52_s26, 32768  ;;  %p5242_p4 = scmp.lt.s32.totalorder %s52_s26, %s52_s26 }
   0xb   :  { %p5238_p3 = scmp.ne.s32.totalorder %s52_s26, %s5237_s17  ;;  %p5243_p5 = scmp.lt.s32.totalorder %s5237_s17, %s5237_s17 }
   0xd   :  { %p5244_p6 = por %p5243_p5, %p5242_p4 }
   0xf   :  { %p5245_p7 = pnand %p5244_p6, %p5238_p3 }
  0x11   :  { %5248 = shalt.err (!%p5245_p7)
}
  0x12   :  { %s5346_s18 = smov 256   ;;  %s5347_s19 = smov 16  }
  0x13   :  { %57 = dma.hbm_to_vmem [thread:$0]  %s5755_s7, 32768, %s52_s26, [#allocation7], %s5346_s18, %s5346_s18, %s5347_s19  }
  0x14   :  { %s5348_s22 = smov [#allocation3]   ;;  %s5249_s27 = scalar_lea.hbm %s5753_s5, 8192 }
  0x15   :  { %s37_s23 = sshll.u32 %s5348_s22, 4  ;;  %p5250_p8 = scmp.ne.s32.totalorder %s5753_s5, %s5249_s27  ;;  %s38_s23 = int_to_ptr.vmem [resolvable:$true] %s37_s23 }
  0x16   :  { %p5253_p9 = scmp.lt.u32.totalorder %s5249_s27, %s5753_s5 }
  0x18   :  { %p5255_p10 = pnand %p5253_p9, %p5250_p8 }
  0x1a   :  { %5258 = shalt.err (!%p5255_p10)
}
  0x1b   :  { %s5259_s15 = scalar_lea.vmem %s38_s23, 8192  ;;  %p5264_p12 = scmp.lt.s32.totalorder %s38_s23, %s38_s23 }
  0x1c   :  { %p5260_p11 = scmp.ne.s32.totalorder %s38_s23, %s5259_s15  ;;  %p5265_p13 = scmp.lt.s32.totalorder %s5259_s15, %s5259_s15 }
  0x1e   :  { %p5266_p0 = por %p5265_p13, %p5264_p12 }
  0x20   :  { %p5267_p1 = pnand %p5266_p0, %p5260_p11 }
  0x22   :  { %5270 = shalt.err (!%p5267_p1)
}
  0x23   :  { %s5349_s7 = smov 512   ;;  %s5350_s26 = smov 32  }
  0x24   :  { %43 = dma.hbm_to_vmem [thread:$0]  %s5753_s5, 8192, %s38_s23, [#allocation4], %s5349_s7, %s5349_s7, %s5350_s26  }
  0x25   :  { %s5351_s18 = smov [#allocation8]   ;;  %s5271_s22 = scalar_lea.hbm %s5757_s9, 8192 }
  0x26   :  { %s65_s19 = sshll.u32 %s5351_s18, 4  ;;  %p5272_p2 = scmp.ne.s32.totalorder %s5757_s9, %s5271_s22  ;;  %s66_s19 = int_to_ptr.vmem [resolvable:$true] %s65_s19 }
  0x27   :  { %p5275_p3 = scmp.lt.u32.totalorder %s5271_s22, %s5757_s9 }
  0x29   :  { %p5277_p4 = pnand %p5275_p3, %p5272_p2 }
  0x2b   :  { %5280 = shalt.err (!%p5277_p4)
}
  0x2c   :  { %s5281_s29 = scalar_lea.vmem %s66_s19, 8192  ;;  %p5286_p6 = scmp.lt.s32.totalorder %s66_s19, %s66_s19 }
  0x2d   :  { %p5282_p5 = scmp.ne.s32.totalorder %s66_s19, %s5281_s29  ;;  %p5287_p7 = scmp.lt.s32.totalorder %s5281_s29, %s5281_s29 }
  0x2f   :  { %p5288_p8 = por %p5287_p7, %p5286_p6 }
  0x31   :  { %p5289_p9 = pnand %p5288_p8, %p5282_p5 }
  0x33   :  { %5292 = shalt.err (!%p5289_p9)
}
  0x34   :  { %s5352_s5 = smov 128   ;;  %s5353_s23 = smov 8  }
  0x35   :  { %71 = dma.hbm_to_vmem [thread:$0]  %s5757_s9, 8192, %s66_s19, [#allocation7], %s5352_s5, %s5352_s5, %s5353_s23  }
  0x36   :  { %s5354_s15 = smov [#allocation9]   ;;  %s5293_s17 = scalar_lea.hbm %s5759_s11, 4096 }
  0x37   :  { %s79_s7 = sshll.u32 %s5354_s15, 4  ;;  %p5294_p10 = scmp.ne.s32.totalorder %s5759_s11, %s5293_s17  ;;  %s80_s7 = int_to_ptr.vmem [resolvable:$true] %s79_s7 }
  0x38   :  { %p5297_p11 = scmp.lt.u32.totalorder %s5293_s17, %s5759_s11 }
  0x3a   :  { %p5299_p12 = pnand %p5297_p11, %p5294_p10 }
  0x3c   :  { %5302 = shalt.err (!%p5299_p12)
}
  0x3d   :  { %s5303_s24 = scalar_lea.vmem %s80_s7, 4096  ;;  %p5308_p0 = scmp.lt.s32.totalorder %s80_s7, %s80_s7 }
  0x3e   :  { %p5304_p13 = scmp.ne.s32.totalorder %s80_s7, %s5303_s24  ;;  %p5309_p1 = scmp.lt.s32.totalorder %s5303_s24, %s5303_s24 }
  0x40   :  { %p5310_p2 = por %p5309_p1, %p5308_p0 }
  0x42   :  { %p5311_p3 = pnand %p5310_p2, %p5304_p13 }
  0x44   :  { %5314 = shalt.err (!%p5311_p3)
}
  0x45   :  { %85 = dma.hbm_to_vmem [thread:$0]  %s5759_s11, 4096, %s80_s7, [#allocation10], %s5352_s5, %s5352_s5, %s5353_s23  }
  0x46   :  { %5337 = dma.done.wait [#allocation4], 8192  }
  0x47   :  { %5338 = vsyncadd [#allocation4], 4294959104 }
  0x48   :  { %5339 = dma.done.wait [#allocation7], 40960  }
  0x49   :  { %5340 = vsyncadd [#allocation7], 4294926336 }
  0x4a   :  { %5341 = dma.done.wait [#allocation10], 4096  }
  0x4b   :  { %5342 = vsyncadd [#allocation10], 4294963200  ;;  %v4694_v0 = vld [vmem:[%s5749_s1] sm:$0xff]   ;;  %v102_v2 = vld [vmem:[%s5748_s0 + $0x8] sm:$0xff]  ;;  %vm128_vm0 = vcmask 130048   ;;  %vm257_vm1 = vcmask 523264  }
  0x4c   :  { %v101_v1 = vld [vmem:[%s5748_s0] sm:$0xff]  ;;  %v103_v3 = vld [vmem:[%s5748_s0 + $0x10] sm:$0xff]  ;;  %4621 = vmatprep.subr.bf16.mxu0 %v4694_v0  ;;  %v104_v5 = vld [vmem:[%s5748_s0 + $0x18] sm:$0xff]  ;;  %vm1260_vm2 = vcmask 1041409   ;;  %vm1262_vm3 = vcmask 1043459   ;;  %vm1264_vm4 = vcmask 1045509  }
  0x4d   :  { %v109_v4 = vpack.c.bf16 %v102_v2, %v101_v1  ;;  %v105_v6 = vld [vmem:[%s5748_s0 + $0x20] sm:$0xff]  ;;  %v106_v7 = vld [vmem:[%s5748_s0 + $0x28] sm:$0xff]  ;;  %4622 = vmatpush3.bf16.msra.mxu0 %v4694_v0  ;;  %v110_v8 = vpack.c.bf16 %v104_v5, %v103_v3  ;;  %v107_v11 = vld [vmem:[%s5748_s0 + $0x30] sm:$0xff]  ;;  %vm1266_vm5 = vcmask 1047559  }
  0x4e   :  { %v111_v9 = vpack.c.bf16 %v106_v7, %v105_v6  ;;  %v4695_v10 = vld [vmem:[%s5751_s3] sm:$0xff]   ;;  %v108_v12 = vld [vmem:[%s5748_s0 + $0x38] sm:$0xff]  ;;  %v4696_v13 = vld [vmem:[%s5751_s3 + $0x8] sm:$0xff]  }
  0x4f   :  { %4623 = vmatprep.mubr.msk.bf16.mxu0 %vm128_vm0, %v109_v4  ;;  %4631 = vmatprep.subr.bf16.mxu1 %v4695_v10  ;;  %v112_v14 = vpack.c.bf16 %v108_v12, %v107_v11  ;;  %v4697_v15 = vld [vmem:[%s5751_s3 + $0x10] sm:$0xff]   ;;  %v4698_v16 = vld [vmem:[%s5751_s3 + $0x18] sm:$0xff]   ;;  %v5519_v17 = vld [vmem:[#allocation3] sm:$0xff] }
  0x50   :  { %4624 = vmatmul.mubr.msk.bf16.vlgmr.msra.gmra.mrb[0].mxu0 %vm128_vm0, %v110_v8  ;;  %4632 = vmatpush3.bf16.msra.mxu1 %v4695_v10  ;;  %v5521_v18 = vld [vmem:[#allocation3 + $0x20] sm:$0xff]  ;;  %v349_v19 = vld [vmem:[#allocation3 + $0x10] sm:$0xff] }
  0x51   :  { %4627 = vmatprep.mubr.msk.bf16.mxu0 %vm128_vm0, %v111_v9  ;;  %4633 = vmatprep.subr.bf16.mxu1 %v4696_v13  ;;  %v4191_v20 = vcombine.low %v5519_v17, %v5521_v18  ;;  %v4192_v21 = vcombine.high %v5519_v17, %v5521_v18  ;;  %v353_v22 = vld [vmem:[#allocation3 + $0x30] sm:$0xff]  ;;  %v4176_v45 = vld [vmem:[%s5750_s2] ss:$0 sm:$0xff] }
  0x52   :  { %v4195_v23 = vcombine.low %v349_v19, %v353_v22  ;;  %v4196_v24 = vcombine.high %v349_v19, %v353_v22  ;;  %v357_v25 = vld [vmem:[#allocation3 + $0x50] sm:$0xff]  ;;  %v355_v58 = vld [vmem:[#allocation3 + $0x40] sm:$0xff] }
  0x53   :  { %v361_v26 = vld [vmem:[#allocation3 + $0x70] sm:$0xff]  ;;  %v359_v59 = vld [vmem:[#allocation3 + $0x60] sm:$0xff] }
  0x54   :  { %4634 = vmatpush3.bf16.msra.mxu1 %v4696_v13  ;;  %v4204_v27 = vcombine.high %v357_v25, %v361_v26  ;;  %v365_v28 = vld [vmem:[#allocation3 + $0x90] sm:$0xff]  ;;  %877 = vmatprep.subr.bf16.mxu0 %v4196_v24  ;;  %v4203_v30 = vcombine.low %v357_v25, %v361_v26  ;;  %v4200_v1 = vcombine.high %v355_v58, %v359_v59  ;;  %v363_v4 = vld [vmem:[#allocation3 + $0x80] sm:$0xff] }
  0x55   :  { %4635 = vmatprep.subr.bf16.mxu1 %v4697_v15  ;;  %v369_v29 = vld [vmem:[#allocation3 + $0xb0] sm:$0xff]  ;;  %878 = vmatpush1.bf16.msra.mxu0 %v4195_v23  ;;  %v367_v5 = vld [vmem:[#allocation3 + $0xa0] sm:$0xff]  ;;  %v4199_v11 = vcombine.low %v355_v58, %v359_v59 }
  0x56   :  { %v373_v31 = vld [vmem:[#allocation3 + $0xd0] sm:$0xff]  ;;  %879 = vmatprep.subr.bf16.mxu0 %v4204_v27  ;;  %v4212_v32 = vcombine.high %v365_v28, %v369_v29  ;;  %v4211_v34 = vcombine.low %v365_v28, %v369_v29  ;;  %v4208_v13 = vcombine.high %v363_v4, %v367_v5  ;;  %v4207_v22 = vcombine.low %v363_v4, %v367_v5  ;;  %v379_v24 = vld [vmem:[#allocation3 + $0x100] sm:$0xff] }
  0x57   :  { %v377_v33 = vld [vmem:[#allocation3 + $0xf0] sm:$0xff]  ;;  %v383_v25 = vld [vmem:[#allocation3 + $0x120] sm:$0xff] }
  0x58   :  { %4628 = vmatmul.mubr.msk.bf16.gmra.mrb[4].mxu0 %vm128_vm0, %v112_v14  ;;  %4636 = vmatpush3.bf16.msra.mxu1 %v4697_v15  ;;  %v381_v35 = vld [vmem:[#allocation3 + $0x110] sm:$0xff]  ;;  %v4220_v36 = vcombine.high %v373_v31, %v377_v33  ;;  %v4219_v38 = vcombine.low %v373_v31, %v377_v33  ;;  %v371_v15 = vld [vmem:[#allocation3 + $0xc0] sm:$0xff]  ;;  %v4224_v18 = vcombine.high %v379_v24, %v383_v25 }
  0x59   :  { %4637 = vmatprep.subr.bf16.mxu1 %v4698_v16  ;;  %880 = vmatpush1.bf16.msra.mxu0 %v4203_v30  ;;  %v385_v37 = vld [vmem:[#allocation3 + $0x130] sm:$0xff]  ;;  %v391_v26 = vld [vmem:[#allocation3 + $0x160] sm:$0xff]  ;;  %v4223_v27 = vcombine.low %v379_v24, %v383_v25  ;;  %v376_v24 = vld [vmem:[#allocation3 + $0xe8] sm:$0xff] }
  0x5a   :  { %881 = vmatprep.subr.bf16.mxu0 %v4212_v32  ;;  %v389_v39 = vld [vmem:[#allocation3 + $0x150] sm:$0xff]  ;;  %v4228_v41 = vcombine.high %v381_v35, %v385_v37  ;;  %v4227_v42 = vcombine.low %v381_v35, %v385_v37  ;;  %v395_v30 = vld [vmem:[#allocation3 + $0x180] sm:$0xff] }
  0x5b   :  { %v393_v40 = vld [vmem:[#allocation3 + $0x170] sm:$0xff]  ;;  %v399_v31 = vld [vmem:[#allocation3 + $0x1a0] sm:$0xff] }
  0x5c   :  { %4638 = vmatpush3.bf16.msra.mxu1 %v4698_v16  ;;  %v4236_v43 = vcombine.high %v389_v39, %v393_v40  ;;  %v4235_v44 = vcombine.low %v389_v39, %v393_v40  ;;  %v375_v16 = vld [vmem:[#allocation3 + $0xe0] sm:$0xff]  ;;  %v397_v32 = vld [vmem:[#allocation3 + $0x190] sm:$0xff]  ;;  %v4240_v33 = vcombine.high %v395_v30, %v399_v31  ;;  %v4239_v35 = vcombine.low %v395_v30, %v399_v31  ;;  %v388_v31 = vld [vmem:[#allocation3 + $0x148] sm:$0xff] }
  0x5d   :  { %731 = vmatprep.subr.bf16.mxu1 %v4192_v21  ;;  %882 = vmatpush1.bf16.msra.mxu0 %v4211_v34  ;;  %v4216_v23 = vcombine.high %v371_v15, %v375_v16  ;;  %v4215_v17 = vcombine.low %v371_v15, %v375_v16  ;;  %v401_v34 = vld [vmem:[#allocation3 + $0x1b0] sm:$0xff]  ;;  %v407_v39 = vld [vmem:[#allocation3 + $0x1e0] sm:$0xff] }
  0x5e   :  { %883 = vmatprep.subr.bf16.mxu0 %v4220_v36  ;;  %v4243_v36 = vcombine.low %v397_v32, %v401_v34  ;;  %v4244_v37 = vcombine.high %v397_v32, %v401_v34  ;;  %v405_v40 = vld [vmem:[#allocation3 + $0x1d0] sm:$0xff]  ;;  %v392_v32 = vld [vmem:[#allocation3 + $0x168] sm:$0xff] }
  0x5f   :  { %v4234_v34 = vcombine.high %v388_v31, %v392_v32 }
  0x61   :  { %884 = vmatpush1.bf16.msra.mxu0 %v4219_v38  ;;  %v403_v38 = vld [vmem:[#allocation3 + $0x1c0] sm:$0xff] }
  0x62   :  { %885 = vmatprep.subr.bf16.mxu0 %v4228_v41  ;;  %v4248_v41 = vcombine.high %v403_v38, %v407_v39 }
  0x65   :  { %886 = vmatpush1.bf16.msra.mxu0 %v4227_v42  ;;  %v409_v42 = vld [vmem:[#allocation3 + $0x1f0] sm:$0xff] }
  0x66   :  { %887 = vmatprep.subr.bf16.mxu0 %v4236_v43  ;;  %v4247_v43 = vcombine.low %v403_v38, %v407_v39  ;;  %v404_v39 = vld [vmem:[#allocation3 + $0x1c8] sm:$0xff] }
  0x69   :  { %888 = vmatpush1.bf16.msra.mxu0 %v4235_v44  ;;  %v4251_v44 = vcombine.low %v405_v40, %v409_v42 }
  0x6a   :  { %889 = vmatprep.subr.bf16.mxu0 %v4244_v37  ;;  %v4233_v37 = vcombine.low %v388_v31, %v392_v32  ;;  %v4726_v31 = vld [vmem:[#allocation6 + $0x88] ss:$16 sps:$4 sm:$0xff]   ;;  %v4731_v32 = vld [vmem:[#allocation6 + $0xa4] ss:$16 sps:$4 sm:$0xff]  }
  0x6d   :  { %890 = vmatpush1.bf16.msra.mxu0 %v4243_v36  ;;  %v400_v36 = vld [vmem:[#allocation3 + $0x1a8] sm:$0xff] }
 0x123   :  { %v4625_v46 = vpop.f32.mrb[0].mxu0 }
 0x124   :  { %v184_v47 = vadd.f32 %v4625_v46, %v4176_v45  ;;  %v175_v48 = vpop.f32.mrb[1].mxu0  ;;  %v348_v46 = vld [vmem:[#allocation3 + $0x8] sm:$0xff] }
 0x125   :  { %v176_v49 = vadd.f32 %v4176_v45, %v175_v48  ;;  %v4626_v50 = vpop.f32.mrb[2].mxu0 }
 0x126   :  { %v187_v51 = vadd.f32 %v4626_v50, %v4176_v45  ;;  %v178_v52 = vpop.f32.mrb[3].mxu0  ;;  %v208_v54 = vmax.f32 %v184_v47, 0.0  ;;  %v352_v47 = vld [vmem:[#allocation3 + $0x28] sm:$0xff] }
 0x127   :  { %v179_v53 = vadd.f32 %v4176_v45, %v178_v52  ;;  %v206_v56 = vmax.f32 %v176_v49, 0.0  ;;  %v4194_v48 = vcombine.high %v348_v46, %v352_v47  ;;  %v5355_v49 = vmov 0  }
 0x128   :  { %v209_v55 = vmax.f32 %v187_v51, 0.0  ;;  %v4193_v50 = vcombine.low %v348_v46, %v352_v47  ;;  %909 = vmatprep.mubr.bf16.mxu0 %v5355_v49  ;;  %v4182_v51 = vld [vmem:[%s5752_s4] ss:$0 sm:$0xff]  ;;  %v358_v47 = vld [vmem:[#allocation3 + $0x58] sm:$0xff] }
 0x129   :  { %v207_v57 = vmax.f32 %v179_v53, 0.0 }
 0x12a   :  { %v215_v60 = vpack.c.bf16 %v209_v55, %v208_v54 }
 0x12b   :  { %v4629_v61 = vpop.f32.mrb[4].mxu0  ;;  %v214_v62 = vpack.c.bf16 %v207_v57, %v206_v56 }
 0x12c   :  { %v200_v63 = vadd.f32 %v4629_v61, %v4176_v45  ;;  %v191_v0 = vpop.f32.mrb[5].mxu0 }
 0x12d   :  { %v192_v2 = vadd.f32 %v4176_v45, %v191_v0  ;;  %4639 = vmatprep.mubr.msk.bf16.mxu1 %vm257_vm1, %v214_v62  ;;  %v4630_v3 = vpop.f32.mrb[6].mxu0  ;;  %v356_v62 = vld [vmem:[#allocation3 + $0x48] sm:$0xff] }
 0x12e   :  { %v212_v6 = vmax.f32 %v200_v63, 0.0  ;;  %v203_v7 = vadd.f32 %v4630_v3, %v4176_v45  ;;  %4640 = vmatmul.mubr.msk.bf16.vlgmr.msra.gmra.mrb[0].mxu1 %vm257_vm1, %v215_v60  ;;  %v194_v8 = vpop.f32.mrb[7].mxu0  ;;  %v360_v63 = vld [vmem:[#allocation3 + $0x68] sm:$0xff] }
 0x12f   :  { %v210_v9 = vmax.f32 %v192_v2, 0.0  ;;  %v195_v10 = vadd.f32 %v4176_v45, %v194_v8  ;;  %732 = vmatpush1.bf16.msra.mxu1 %v4191_v20  ;;  %v387_v20 = vld [vmem:[#allocation3 + $0x140] sm:$0xff]  ;;  %v4252_v45 = vcombine.high %v405_v40, %v409_v42  ;;  %v4202_v5 = vcombine.high %v356_v62, %v360_v63  ;;  %v364_v8 = vld [vmem:[#allocation3 + $0x88] sm:$0xff] }
 0x130   :  { %v213_v12 = vmax.f32 %v203_v7, 0.0  ;;  %733 = vmatprep.subr.bf16.mxu1 %v4200_v1  ;;  %v4232_v28 = vcombine.high %v387_v20, %v391_v26  ;;  %v4231_v29 = vcombine.low %v387_v20, %v391_v26  ;;  %v4201_v15 = vcombine.low %v356_v62, %v360_v63  ;;  %v408_v40 = vld [vmem:[#allocation3 + $0x1e8] sm:$0xff] }
 0x131   :  { %v211_v14 = vmax.f32 %v195_v10, 0.0  ;;  %891 = vmatprep.subr.bf16.mxu0 %v4252_v45  ;;  %v4250_v42 = vcombine.high %v404_v39, %v408_v40  ;;  %v4249_v45 = vcombine.low %v404_v39, %v408_v40  ;;  %v4738_v39 = vld [vmem:[#allocation6 + $0xc8] ss:$16 sps:$4 sm:$0xff]   ;;  %v4743_v40 = vld [vmem:[#allocation6 + $0xe4] ss:$16 sps:$4 sm:$0xff]  }
 0x132   :  { %v217_v19 = vpack.c.bf16 %v213_v12, %v212_v6  ;;  %892 = vmatpush1.bf16.msra.mxu0 %v4251_v44  ;;  %v354_v44 = vld [vmem:[#allocation3 + $0x38] sm:$0xff] }
 0x133   :  { %v216_v21 = vpack.c.bf16 %v211_v14, %v210_v9  ;;  %734 = vmatpush1.bf16.msra.mxu1 %v4199_v11  ;;  %v368_v9 = vld [vmem:[#allocation3 + $0xa8] sm:$0xff] }
 0x134   :  { %735 = vmatprep.subr.bf16.mxu1 %v4208_v13 }
 0x135   :  { %4643 = vmatprep.mubr.msk.bf16.mxu1 %vm257_vm1, %v216_v21  ;;  %v4210_v21 = vcombine.high %v364_v8, %v368_v9 }
 0x136   :  { %4644 = vmatmul.mubr.msk.bf16.gmra.mrb[4].mxu1 %vm257_vm1, %v217_v19 }
 0x137   :  { %736 = vmatpush1.bf16.msra.mxu1 %v4207_v22  ;;  %763 = vmatprep.mubr.bf16.mxu1 %v5355_v49 }
 0x138   :  { %737 = vmatprep.subr.bf16.mxu1 %v4216_v23  ;;  %v372_v23 = vld [vmem:[#allocation3 + $0xc8] sm:$0xff] }
 0x139   :  { %v4218_v26 = vcombine.high %v372_v23, %v376_v24 }
 0x13b   :  { %738 = vmatpush1.bf16.msra.mxu1 %v4215_v17 }
 0x13c   :  { %739 = vmatprep.subr.bf16.mxu1 %v4224_v18  ;;  %v4209_v18 = vcombine.low %v364_v8, %v368_v9 }
 0x13f   :  { %740 = vmatpush1.bf16.msra.mxu1 %v4223_v27  ;;  %v380_v27 = vld [vmem:[#allocation3 + $0x108] sm:$0xff] }
 0x140   :  { %741 = vmatprep.subr.bf16.mxu1 %v4232_v28  ;;  %v384_v28 = vld [vmem:[#allocation3 + $0x128] sm:$0xff] }
 0x141   :  { %v4226_v30 = vcombine.high %v380_v27, %v384_v28 }
 0x143   :  { %742 = vmatpush1.bf16.msra.mxu1 %v4231_v29  ;;  %v4217_v29 = vcombine.low %v372_v23, %v376_v24  ;;  %v4705_v23 = vld [vmem:[#allocation6 + $0x20] ss:$16 sps:$4 sm:$0xff]   ;;  %v4713_v24 = vld [vmem:[#allocation6 + $0x44] ss:$16 sps:$4 sm:$0xff]  }
 0x144   :  { %743 = vmatprep.subr.bf16.mxu1 %v4240_v33  ;;  %v4225_v33 = vcombine.low %v380_v27, %v384_v28  ;;  %v4720_v27 = vld [vmem:[#allocation6 + $0x68] ss:$16 sps:$4 sm:$0xff]   ;;  %v4725_v28 = vld [vmem:[#allocation6 + $0x84] ss:$16 sps:$4 sm:$0xff]  }
 0x147   :  { %744 = vmatpush1.bf16.msra.mxu1 %v4239_v35  ;;  %v396_v35 = vld [vmem:[#allocation3 + $0x188] sm:$0xff] }
 0x148   :  { %745 = vmatprep.subr.bf16.mxu1 %v4248_v41  ;;  %v4242_v38 = vcombine.high %v396_v35, %v400_v36  ;;  %v4241_v41 = vcombine.low %v396_v35, %v400_v36  ;;  %v4732_v35 = vld [vmem:[#allocation6 + $0xa8] ss:$16 sps:$4 sm:$0xff]   ;;  %v4737_v36 = vld [vmem:[#allocation6 + $0xc4] ss:$16 sps:$4 sm:$0xff]  }
 0x14b   :  { %746 = vmatpush1.bf16.msra.mxu1 %v4247_v43  ;;  %v350_v43 = vld [vmem:[#allocation3 + $0x18] sm:$0xff] }
 0x14c   :  { %804 = vmatprep.subr.bf16.mxu1 %v4194_v48  ;;  %v4198_v46 = vcombine.high %v350_v43, %v354_v44  ;;  %v362_v48 = vld [vmem:[#allocation3 + $0x78] sm:$0xff] }
 0x201   :  { %v4641_v52 = vpop.f32.mrb[0].mxu1 }
 0x202   :  { %v313_v53 = vadd.f32 %v4641_v52, %v4182_v51  ;;  %v304_v54 = vpop.f32.mrb[1].mxu1  ;;  %v366_v52 = vld [vmem:[#allocation3 + $0x98] sm:$0xff] }
 0x203   :  { %v305_v55 = vadd.f32 %v4182_v51, %v304_v54  ;;  %v4642_v56 = vpop.f32.mrb[2].mxu1  ;;  %v4205_v54 = vcombine.low %v358_v47, %v362_v48 }
 0x204   :  { %v316_v57 = vadd.f32 %v4642_v56, %v4182_v51  ;;  %v307_v58 = vpop.f32.mrb[3].mxu1  ;;  %v337_v60 = vmax.f32 %v313_v53, 0.0  ;;  %v370_v53 = vld [vmem:[#allocation3 + $0xb8] sm:$0xff] }
 0x205   :  { %v308_v59 = vadd.f32 %v4182_v51, %v307_v58  ;;  %v335_v0 = vmax.f32 %v305_v55, 0.0  ;;  %v4214_v55 = vcombine.high %v366_v52, %v370_v53  ;;  %v374_v56 = vld [vmem:[#allocation3 + $0xd8] sm:$0xff]  ;;  %v4213_v58 = vcombine.low %v366_v52, %v370_v53  ;;  %v4761_v53 = vld [vmem:[#allocation6 + $0x144] ss:$16 sps:$4 sm:$0xff]  }
 0x206   :  { %v338_v61 = vmax.f32 %v316_v57, 0.0  ;;  %v378_v57 = vld [vmem:[#allocation3 + $0xf8] sm:$0xff] }
 0x207   :  { %v336_v1 = vmax.f32 %v308_v59, 0.0  ;;  %v4222_v59 = vcombine.high %v374_v56, %v378_v57  ;;  %v4221_v62 = vcombine.low %v374_v56, %v378_v57  ;;  %v4756_v52 = vld [vmem:[#allocation6 + $0x128] ss:$16 sps:$4 sm:$0xff]   ;;  %v4767_v57 = vld [vmem:[#allocation6 + $0x164] ss:$16 sps:$4 sm:$0xff]  }
 0x208   :  { %v5542_v2 = vpack.c.bf16 %v338_v61, %v337_v60  ;;  %v382_v60 = vld [vmem:[#allocation3 + $0x118] sm:$0xff] }
 0x209   :  { %v5544_v3 = vpack.c.bf16 %v336_v1, %v335_v0  ;;  %v4645_v4 = vpop.f32.mrb[4].mxu1  ;;  %v386_v61 = vld [vmem:[#allocation3 + $0x138] sm:$0xff] }
 0x20a   :  { %v329_v6 = vadd.f32 %v4645_v4, %v4182_v51  ;;  %v320_v7 = vpop.f32.mrb[5].mxu1  ;;  %v4230_v63 = vcombine.high %v382_v60, %v386_v61  ;;  %v390_v0 = vld [vmem:[#allocation3 + $0x158] sm:$0xff]  ;;  %v4229_v4 = vcombine.low %v382_v60, %v386_v61  ;;  %v4773_v61 = vld [vmem:[#allocation6 + $0x184] ss:$16 sps:$4 sm:$0xff]  }
 0x20b   :  { %v321_v10 = vadd.f32 %v4182_v51, %v320_v7  ;;  %764 = vmatmul.mubr.bf16.vlgmr.msra.gmra.mrb[8].mxu1 %v5544_v3  ;;  %910 = vmatmul.mubr.bf16.vlgmr.msra.gmra.mrb[8].mxu0 %v5544_v3  ;;  %v4646_v11 = vpop.f32.mrb[6].mxu1  ;;  %v394_v1 = vld [vmem:[#allocation3 + $0x178] sm:$0xff] }
 0x20c   :  { %v341_v12 = vmax.f32 %v329_v6, 0.0  ;;  %805 = vmatpush1.bf16.msra.mxu1 %v4193_v50  ;;  %v332_v13 = vadd.f32 %v4646_v11, %v4182_v51  ;;  %v323_v14 = vpop.f32.mrb[7].mxu1  ;;  %773 = vmatprep.mubr.bf16.mxu1 %v5355_v49  ;;  %v4197_v50 = vcombine.low %v350_v43, %v354_v44  ;;  %v398_v6 = vld [vmem:[#allocation3 + $0x198] sm:$0xff]  ;;  %v4237_v8 = vcombine.low %v390_v0, %v394_v1  ;;  %v4749_v44 = vld [vmem:[#allocation6 + $0x104] ss:$16 sps:$4 sm:$0xff]  }
 0x20d   :  { %v339_v16 = vmax.f32 %v321_v10, 0.0  ;;  %v324_v19 = vadd.f32 %v4182_v51, %v323_v14  ;;  %806 = vmatprep.subr.bf16.mxu1 %v4202_v5  ;;  %919 = vmatprep.mubr.bf16.mxu0 %v5355_v49  ;;  %v4206_v51 = vcombine.high %v358_v47, %v362_v48  ;;  %v4238_v5 = vcombine.high %v390_v0, %v394_v1  ;;  %v402_v7 = vld [vmem:[#allocation3 + $0x1b8] sm:$0xff]  ;;  %v4755_v48 = vld [vmem:[#allocation6 + $0x124] ss:$16 sps:$4 sm:$0xff]  }
 0x20e   :  { %v342_v22 = vmax.f32 %v332_v13, 0.0  ;;  %v4246_v9 = vcombine.high %v398_v6, %v402_v7  ;;  %v406_v10 = vld [vmem:[#allocation3 + $0x1d8] sm:$0xff]  ;;  %v4779_v1 = vld [vmem:[#allocation6 + $0x1a4] ss:$16 sps:$4 sm:$0xff]  }
 0x20f   :  { %v340_v25 = vmax.f32 %v324_v19, 0.0  ;;  %v410_v11 = vld [vmem:[#allocation3 + $0x1f8] sm:$0xff]  ;;  %v4699_v19 = vld [vmem:[#allocation6] ss:$16 sps:$4 sm:$0xff]  }
 0x210   :  { %v5550_v17 = vpack.c.bf16 %v342_v22, %v341_v12  ;;  %807 = vmatpush1.bf16.msra.mxu1 %v4201_v15  ;;  %v4245_v12 = vcombine.low %v398_v6, %v402_v7  ;;  %v4254_v13 = vcombine.high %v406_v10, %v410_v11  ;;  %v4253_v14 = vcombine.low %v406_v10, %v410_v11  ;;  %v4701_v15 = vld [vmem:[#allocation6 + $0x4] ss:$16 sps:$4 sm:$0xff]   ;;  %v4710_v22 = vld [vmem:[#allocation6 + $0x2c] ss:$16 sps:$4 sm:$0xff]   ;;  %v4744_v43 = vld [vmem:[#allocation6 + $0xe8] ss:$16 sps:$4 sm:$0xff]  }
 0x211   :  { %v5552_v20 = vpack.c.bf16 %v340_v25, %v339_v16  ;;  %808 = vmatprep.subr.bf16.mxu1 %v4210_v21  ;;  %v4704_v16 = vld [vmem:[#allocation6 + $0xc] ss:$16 sps:$4 sm:$0xff]   ;;  %v4702_v21 = vld [vmem:[#allocation6 + $0x8] ss:$16 sps:$4 sm:$0xff]   ;;  %3084 = vmatprep.subr.bf16.mxu0 %v4701_v15  ;;  %v4711_v25 = vld [vmem:[#allocation6 + $0x40] ss:$16 sps:$4 sm:$0xff]  }
 0x212   :  { %3085 = vmatpush1.bf16.msra.mxu0 %v4699_v19  ;;  %v4750_v47 = vld [vmem:[#allocation6 + $0x108] ss:$16 sps:$4 sm:$0xff]   ;;  %v4785_v7 = vld [vmem:[#allocation6 + $0x1c4] ss:$16 sps:$4 sm:$0xff]  }
 0x213   :  { %774 = vmatmul.mubr.bf16.gmra.mrb[12].mxu1 %v5542_v2  ;;  %920 = vmatmul.mubr.bf16.gmra.mrb[12].mxu0 %v5542_v2  ;;  %v4762_v56 = vld [vmem:[#allocation6 + $0x148] ss:$16 sps:$4 sm:$0xff]   ;;  %v4791_v11 = vld [vmem:[#allocation6 + $0x1e4] ss:$16 sps:$4 sm:$0xff]  }
 0x214   :  { %809 = vmatpush1.bf16.msra.mxu1 %v4209_v18  ;;  %783 = vmatprep.mubr.bf16.mxu1 %v5355_v49  ;;  %v4719_v18 = vld [vmem:[#allocation6 + $0x64] ss:$16 sps:$4 sm:$0xff]   ;;  %v4768_v60 = vld [vmem:[#allocation6 + $0x168] ss:$16 sps:$4 sm:$0xff]  }
 0x215   :  { %810 = vmatprep.subr.bf16.mxu1 %v4218_v26  ;;  %929 = vmatprep.mubr.bf16.mxu0 %v5355_v49  ;;  %v4717_v26 = vld [vmem:[#allocation6 + $0x60] ss:$16 sps:$4 sm:$0xff]   ;;  %v4774_v0 = vld [vmem:[#allocation6 + $0x188] ss:$16 sps:$4 sm:$0xff]   ;;  %v4797_v15 = vld [vmem:[#allocation6 + $0x204] ss:$16 sps:$4 sm:$0xff]  }
 0x216   :  { %v4780_v6 = vld [vmem:[#allocation6 + $0x1a8] ss:$16 sps:$4 sm:$0xff]  }
 0x217   :  { %v4786_v10 = vld [vmem:[#allocation6 + $0x1c8] ss:$16 sps:$4 sm:$0xff]  }
 0x218   :  { %811 = vmatpush1.bf16.msra.mxu1 %v4217_v29  ;;  %v4728_v29 = vld [vmem:[#allocation6 + $0x8c] ss:$16 sps:$4 sm:$0xff]  }
 0x219   :  { %812 = vmatprep.subr.bf16.mxu1 %v4226_v30  ;;  %v4723_v30 = vld [vmem:[#allocation6 + $0x80] ss:$16 sps:$4 sm:$0xff]  }
 0x21b   :  { %784 = vmatmul.mubr.bf16.gmra.mrb[16].mxu1 %v5552_v20  ;;  %930 = vmatmul.mubr.bf16.gmra.mrb[16].mxu0 %v5552_v20 }
 0x21c   :  { %813 = vmatpush1.bf16.msra.mxu1 %v4225_v33  ;;  %793 = vmatprep.mubr.bf16.mxu1 %v5355_v49  ;;  %v4734_v33 = vld [vmem:[#allocation6 + $0xac] ss:$16 sps:$4 sm:$0xff]  }
 0x21d   :  { %814 = vmatprep.subr.bf16.mxu1 %v4234_v34  ;;  %939 = vmatprep.mubr.bf16.mxu0 %v5355_v49  ;;  %v4729_v34 = vld [vmem:[#allocation6 + $0xa0] ss:$16 sps:$4 sm:$0xff]  }
 0x220   :  { %815 = vmatpush1.bf16.msra.mxu1 %v4233_v37  ;;  %v4740_v37 = vld [vmem:[#allocation6 + $0xcc] ss:$16 sps:$4 sm:$0xff]  }
 0x221   :  { %816 = vmatprep.subr.bf16.mxu1 %v4242_v38  ;;  %v4735_v38 = vld [vmem:[#allocation6 + $0xc0] ss:$16 sps:$4 sm:$0xff]  }
 0x223   :  { %794 = vmatmul.mubr.bf16.gmra.mrb[20].mxu1 %v5550_v17  ;;  %940 = vmatmul.mubr.bf16.gmra.mrb[20].mxu0 %v5550_v17 }
 0x224   :  { %817 = vmatpush1.bf16.msra.mxu1 %v4241_v41  ;;  %836 = vmatprep.mubr.bf16.mxu1 %v5355_v49  ;;  %v4746_v41 = vld [vmem:[#allocation6 + $0xec] ss:$16 sps:$4 sm:$0xff]  }
 0x225   :  { %818 = vmatprep.subr.bf16.mxu1 %v4250_v42  ;;  %v4741_v42 = vld [vmem:[#allocation6 + $0xe0] ss:$16 sps:$4 sm:$0xff]  }
 0x228   :  { %819 = vmatpush1.bf16.msra.mxu1 %v4249_v45  ;;  %v4752_v45 = vld [vmem:[#allocation6 + $0x10c] ss:$16 sps:$4 sm:$0xff]  }
 0x229   :  { %950 = vmatprep.subr.bf16.mxu1 %v4198_v46  ;;  %v4747_v46 = vld [vmem:[#allocation6 + $0x100] ss:$16 sps:$4 sm:$0xff]  }
 0x22b   :  { %837 = vmatmul.mubr.bf16.vlgmr.msra.gmra.mrb[24].mxu1 %v5544_v3 }
 0x22c   :  { %951 = vmatpush1.bf16.msra.mxu1 %v4197_v50  ;;  %846 = vmatprep.mubr.bf16.mxu1 %v5355_v49  ;;  %v4758_v50 = vld [vmem:[#allocation6 + $0x12c] ss:$16 sps:$4 sm:$0xff]  }
 0x22d   :  { %952 = vmatprep.subr.bf16.mxu1 %v4206_v51  ;;  %v4753_v51 = vld [vmem:[#allocation6 + $0x120] ss:$16 sps:$4 sm:$0xff]  }
 0x230   :  { %953 = vmatpush1.bf16.msra.mxu1 %v4205_v54  ;;  %v4764_v54 = vld [vmem:[#allocation6 + $0x14c] ss:$16 sps:$4 sm:$0xff]  }
 0x231   :  { %954 = vmatprep.subr.bf16.mxu1 %v4214_v55  ;;  %v4759_v55 = vld [vmem:[#allocation6 + $0x140] ss:$16 sps:$4 sm:$0xff]  }
 0x233   :  { %847 = vmatmul.mubr.bf16.gmra.mrb[28].mxu1 %v5542_v2 }
 0x234   :  { %955 = vmatpush1.bf16.msra.mxu1 %v4213_v58  ;;  %856 = vmatprep.mubr.bf16.mxu1 %v5355_v49  ;;  %v4770_v58 = vld [vmem:[#allocation6 + $0x16c] ss:$16 sps:$4 sm:$0xff]  }
 0x235   :  { %956 = vmatprep.subr.bf16.mxu1 %v4222_v59  ;;  %v4765_v59 = vld [vmem:[#allocation6 + $0x160] ss:$16 sps:$4 sm:$0xff]  }
 0x238   :  { %957 = vmatpush1.bf16.msra.mxu1 %v4221_v62  ;;  %v4776_v62 = vld [vmem:[#allocation6 + $0x18c] ss:$16 sps:$4 sm:$0xff]  }
 0x239   :  { %958 = vmatprep.subr.bf16.mxu1 %v4230_v63  ;;  %v4771_v63 = vld [vmem:[#allocation6 + $0x180] ss:$16 sps:$4 sm:$0xff]  }
 0x23b   :  { %857 = vmatmul.mubr.bf16.gmra.mrb[32].mxu1 %v5552_v20 }
 0x23c   :  { %959 = vmatpush1.bf16.msra.mxu1 %v4229_v4  ;;  %866 = vmatprep.mubr.bf16.mxu1 %v5355_v49  ;;  %v4782_v4 = vld [vmem:[#allocation6 + $0x1ac] ss:$16 sps:$4 sm:$0xff]  }
 0x23d   :  { %960 = vmatprep.subr.bf16.mxu1 %v4238_v5  ;;  %v4777_v5 = vld [vmem:[#allocation6 + $0x1a0] ss:$16 sps:$4 sm:$0xff]  }
 0x240   :  { %961 = vmatpush1.bf16.msra.mxu1 %v4237_v8  ;;  %v4788_v8 = vld [vmem:[#allocation6 + $0x1cc] ss:$16 sps:$4 sm:$0xff]  }
 0x241   :  { %962 = vmatprep.subr.bf16.mxu1 %v4246_v9  ;;  %v4783_v9 = vld [vmem:[#allocation6 + $0x1c0] ss:$16 sps:$4 sm:$0xff]  }
 0x243   :  { %867 = vmatmul.mubr.bf16.gmra.mrb[36].mxu1 %v5550_v17 }
 0x244   :  { %963 = vmatpush1.bf16.msra.mxu1 %v4245_v12  ;;  %982 = vmatprep.mubr.bf16.mxu1 %v5355_v49  ;;  %v4794_v12 = vld [vmem:[#allocation6 + $0x1ec] ss:$16 sps:$4 sm:$0xff]  }
 0x245   :  { %964 = vmatprep.subr.bf16.mxu1 %v4254_v13  ;;  %v4789_v13 = vld [vmem:[#allocation6 + $0x1e0] ss:$16 sps:$4 sm:$0xff]  }
 0x248   :  { %965 = vmatpush1.bf16.msra.mxu1 %v4253_v14  ;;  %v4792_v14 = vld [vmem:[#allocation6 + $0x1e8] ss:$16 sps:$4 sm:$0xff]  }
 0x249   :  { %3248 = vmatprep.subr.bf16.mxu1 %v4704_v16  ;;  %v4800_v16 = vld [vmem:[#allocation6 + $0x20c] ss:$16 sps:$4 sm:$0xff]  }
 0x24b   :  { %983 = vmatmul.mubr.bf16.vlgmr.msra.gmra.mrb[40].mxu1 %v5544_v3  ;;  %v4707_v3 = vld [vmem:[#allocation6 + $0x24] ss:$16 sps:$4 sm:$0xff]  }
 0x24c   :  { %992 = vmatprep.mubr.bf16.mxu1 %v5355_v49  ;;  %3249 = vmatpush1.bf16.msra.mxu1 %v4702_v21 }
 0x24d   :  { %3086 = vmatprep.subr.bf16.mxu0 %v4707_v3  ;;  %3250 = vmatprep.subr.bf16.mxu1 %v4710_v22 }
 0x24e   :  { %3087 = vmatpush1.bf16.msra.mxu0 %v4705_v23 }
 0x24f   :  { %3088 = vmatprep.subr.bf16.mxu0 %v4713_v24 }
 0x252   :  { %3089 = vmatpush1.bf16.msra.mxu0 %v4711_v25 }
 0x253   :  { %993 = vmatmul.mubr.bf16.gmra.mrb[44].mxu1 %v5542_v2  ;;  %v4708_v2 = vld [vmem:[#allocation6 + $0x28] ss:$16 sps:$4 sm:$0xff]   ;;  %3090 = vmatprep.subr.bf16.mxu0 %v4719_v18 }
 0x254   :  { %1002 = vmatprep.mubr.bf16.mxu1 %v5355_v49  ;;  %3251 = vmatpush1.bf16.msra.mxu1 %v4708_v2 }
 0x256   :  { %3091 = vmatpush1.bf16.msra.mxu0 %v4717_v26 }
 0x257   :  { %3092 = vmatprep.subr.bf16.mxu0 %v4725_v28 }
 0x25a   :  { %3093 = vmatpush1.bf16.msra.mxu0 %v4723_v30 }
 0x25b   :  { %1003 = vmatmul.mubr.bf16.gmra.mrb[48].mxu1 %v5552_v20  ;;  %v4722_v20 = vld [vmem:[#allocation6 + $0x6c] ss:$16 sps:$4 sm:$0xff]   ;;  %3094 = vmatprep.subr.bf16.mxu0 %v4731_v32 }
 0x25c   :  { %1012 = vmatprep.mubr.bf16.mxu1 %v5355_v49  ;;  %v4716_v49 = vld [vmem:[#allocation6 + $0x4c] ss:$16 sps:$4 sm:$0xff]  }
 0x25d   :  { %3252 = vmatprep.subr.bf16.mxu1 %v4716_v49 }
 0x25e   :  { %3095 = vmatpush1.bf16.msra.mxu0 %v4729_v34 }
 0x25f   :  { %3096 = vmatprep.subr.bf16.mxu0 %v4737_v36 }
 0x262   :  { %3097 = vmatpush1.bf16.msra.mxu0 %v4735_v38 }
 0x263   :  { %1013 = vmatmul.mubr.bf16.gmra.mrb[52].mxu1 %v5550_v17  ;;  %v4714_v17 = vld [vmem:[#allocation6 + $0x48] ss:$16 sps:$4 sm:$0xff]   ;;  %3098 = vmatprep.subr.bf16.mxu0 %v4743_v40 }
 0x264   :  { %3253 = vmatpush1.bf16.msra.mxu1 %v4714_v17 }
 0x265   :  { %3254 = vmatprep.subr.bf16.mxu1 %v4722_v20 }
 0x266   :  { %3099 = vmatpush1.bf16.msra.mxu0 %v4741_v42 }
 0x267   :  { %3100 = vmatprep.subr.bf16.mxu0 %v4749_v44 }
 0x268   :  { %3255 = vmatpush1.bf16.msra.mxu1 %v4720_v27 }
 0x269   :  { %3256 = vmatprep.subr.bf16.mxu1 %v4728_v29 }
 0x26a   :  { %3101 = vmatpush1.bf16.msra.mxu0 %v4747_v46 }
 0x26b   :  { %3102 = vmatprep.subr.bf16.mxu0 %v4755_v48 }
 0x26c   :  { %3257 = vmatpush1.bf16.msra.mxu1 %v4726_v31 }
 0x26d   :  { %3258 = vmatprep.subr.bf16.mxu1 %v4734_v33 }
 0x26e   :  { %3103 = vmatpush1.bf16.msra.mxu0 %v4753_v51 }
 0x26f   :  { %3104 = vmatprep.subr.bf16.mxu0 %v4761_v53 }
 0x270   :  { %3259 = vmatpush1.bf16.msra.mxu1 %v4732_v35 }
 0x271   :  { %3260 = vmatprep.subr.bf16.mxu1 %v4740_v37 }
 0x272   :  { %3105 = vmatpush1.bf16.msra.mxu0 %v4759_v55 }
 0x273   :  { %3106 = vmatprep.subr.bf16.mxu0 %v4767_v57 }
 0x274   :  { %3261 = vmatpush1.bf16.msra.mxu1 %v4738_v39 }
 0x275   :  { %3262 = vmatprep.subr.bf16.mxu1 %v4746_v41 }
 0x276   :  { %3107 = vmatpush1.bf16.msra.mxu0 %v4765_v59 }
 0x277   :  { %3108 = vmatprep.subr.bf16.mxu0 %v4773_v61 }
 0x278   :  { %3263 = vmatpush1.bf16.msra.mxu1 %v4744_v43 }
 0x279   :  { %3264 = vmatprep.subr.bf16.mxu1 %v4752_v45 }
 0x27a   :  { %3109 = vmatpush1.bf16.msra.mxu0 %v4771_v63 }
 0x27b   :  { %3110 = vmatprep.subr.bf16.mxu0 %v4779_v1 }
 0x27c   :  { %3265 = vmatpush1.bf16.msra.mxu1 %v4750_v47 }
 0x27d   :  { %3266 = vmatprep.subr.bf16.mxu1 %v4758_v50 }
 0x27e   :  { %3111 = vmatpush1.bf16.msra.mxu0 %v4777_v5 }
 0x27f   :  { %3112 = vmatprep.subr.bf16.mxu0 %v4785_v7 }
 0x280   :  { %3267 = vmatpush1.bf16.msra.mxu1 %v4756_v52 }
 0x281   :  { %3268 = vmatprep.subr.bf16.mxu1 %v4764_v54 }
 0x282   :  { %3113 = vmatpush1.bf16.msra.mxu0 %v4783_v9 }
 0x283   :  { %3114 = vmatprep.subr.bf16.mxu0 %v4791_v11 }
 0x284   :  { %3269 = vmatpush1.bf16.msra.mxu1 %v4762_v56 }
 0x285   :  { %3270 = vmatprep.subr.bf16.mxu1 %v4770_v58 }
 0x286   :  { %3115 = vmatpush1.bf16.msra.mxu0 %v4789_v13 }
 0x287   :  { %3125 = vmatprep.subr.bf16.mxu0 %v4797_v15 }
 0x288   :  { %3271 = vmatpush1.bf16.msra.mxu1 %v4768_v60 }
 0x289   :  { %3272 = vmatprep.subr.bf16.mxu1 %v4776_v62 }
 0x28c   :  { %3273 = vmatpush1.bf16.msra.mxu1 %v4774_v0 }
 0x28d   :  { %3274 = vmatprep.subr.bf16.mxu1 %v4782_v4 }
 0x290   :  { %3275 = vmatpush1.bf16.msra.mxu1 %v4780_v6 }
 0x291   :  { %3276 = vmatprep.subr.bf16.mxu1 %v4788_v8 }
 0x294   :  { %3277 = vmatpush1.bf16.msra.mxu1 %v4786_v10 }
 0x295   :  { %3278 = vmatprep.subr.bf16.mxu1 %v4794_v12 }
 0x298   :  { %3279 = vmatpush1.bf16.msra.mxu1 %v4792_v14 }
 0x299   :  { %3289 = vmatprep.subr.bf16.mxu1 %v4800_v16 }
 0x2de   :  { %v765_v19 = vpop.f32.mrb[8].mxu1  ;;  %v911_v21 = vpop.f32.mrb[8].mxu0 }
 0x2df   :  { %v767_v3 = vpop.f32.mrb[9].mxu1  ;;  %v913_v22 = vpop.f32.mrb[9].mxu0 }
 0x2e0   :  { %v769_v23 = vpop.f32.mrb[10].mxu1  ;;  %v915_v2 = vpop.f32.mrb[10].mxu0 }
 0x2e1   :  { %v1023_v24 = vmax.f32 %v765_v19, %v769_v23  ;;  %v1059_v49 = vmax.f32 %v911_v21, %v915_v2  ;;  %v771_v25 = vpop.f32.mrb[11].mxu1  ;;  %v917_v17 = vpop.f32.mrb[11].mxu0 }
 0x2e2   :  { %v1032_v18 = vmax.f32 %v767_v3, %v771_v25  ;;  %v1068_v20 = vmax.f32 %v913_v22, %v917_v17 }
 0x2e6   :  { %v775_v26 = vpop.f32.mrb[12].mxu1  ;;  %v921_v27 = vpop.f32.mrb[12].mxu0 }
 0x2e7   :  { %v1024_v28 = vmax.f32 %v1023_v24, %v775_v26  ;;  %v1060_v29 = vmax.f32 %v1059_v49, %v921_v27  ;;  %v777_v30 = vpop.f32.mrb[13].mxu1  ;;  %v923_v31 = vpop.f32.mrb[13].mxu0 }
 0x2e8   :  { %v1033_v32 = vmax.f32 %v1032_v18, %v777_v30  ;;  %v1069_v33 = vmax.f32 %v1068_v20, %v923_v31  ;;  %v779_v34 = vpop.f32.mrb[14].mxu1  ;;  %v925_v35 = vpop.f32.mrb[14].mxu0 }
 0x2e9   :  { %v1025_v36 = vmax.f32 %v1024_v28, %v779_v34  ;;  %v1061_v37 = vmax.f32 %v1060_v29, %v925_v35  ;;  %v781_v38 = vpop.f32.mrb[15].mxu1  ;;  %v927_v39 = vpop.f32.mrb[15].mxu0 }
 0x2ea   :  { %v1034_v40 = vmax.f32 %v1033_v32, %v781_v38  ;;  %v1070_v41 = vmax.f32 %v1069_v33, %v927_v39 }
 0x2eb   :  { %v1026_v42 = vrot.slane %v1025_v36, 4  ;;  %v1062_v43 = vrot.slane %v1061_v37, 4 }
 0x2ec   :  { %v1035_v44 = vrot.slane %v1034_v40, 4  ;;  %v1071_v45 = vrot.slane %v1070_v41, 4 }
 0x2ed   :  { %v1027_v46 = vmax.f32 %v1025_v36, %v1026_v42  ;;  %v1063_v47 = vmax.f32 %v1061_v37, %v1062_v43 }
 0x2ee   :  { %v1036_v48 = vmax.f32 %v1034_v40, %v1035_v44  ;;  %v1072_v50 = vmax.f32 %v1070_v41, %v1071_v45  ;;  %v785_v51 = vpop.f32.mrb[16].mxu1  ;;  %v931_v52 = vpop.f32.mrb[16].mxu0 }
 0x2ef   :  { %v1028_v53 = vrot.slane %v1027_v46, 2  ;;  %v1064_v54 = vrot.slane %v1063_v47, 2  ;;  %v787_v55 = vpop.f32.mrb[17].mxu1  ;;  %v933_v56 = vpop.f32.mrb[17].mxu0 }
 0x2f0   :  { %v1037_v57 = vrot.slane %v1036_v48, 2  ;;  %v1073_v58 = vrot.slane %v1072_v50, 2  ;;  %v789_v59 = vpop.f32.mrb[18].mxu1  ;;  %v935_v60 = vpop.f32.mrb[18].mxu0 }
 0x2f1   :  { %v1029_v61 = vmax.f32 %v1027_v46, %v1028_v53  ;;  %v1065_v62 = vmax.f32 %v1063_v47, %v1064_v54  ;;  %v1095_v63 = vmax.f32 %v785_v51, %v789_v59  ;;  %v1131_v0 = vmax.f32 %v931_v52, %v935_v60  ;;  %v791_v1 = vpop.f32.mrb[19].mxu1  ;;  %v937_v4 = vpop.f32.mrb[19].mxu0 }
 0x2f2   :  { %v1038_v5 = vmax.f32 %v1036_v48, %v1037_v57  ;;  %v1074_v6 = vmax.f32 %v1072_v50, %v1073_v58  ;;  %v1104_v7 = vmax.f32 %v787_v55, %v791_v1  ;;  %v1140_v8 = vmax.f32 %v933_v56, %v937_v4 }
 0x2f3   :  { %v1030_v9 = vrot.slane %v1029_v61, 1  ;;  %v1066_v10 = vrot.slane %v1065_v62, 1 }
 0x2f4   :  { %v1039_v11 = vrot.slane %v1038_v5, 1  ;;  %v1075_v12 = vrot.slane %v1074_v6, 1 }
 0x2f5   :  { %v5580_v13 = vmax.f32 %v1029_v61, %v1030_v9  ;;  %v5582_v14 = vmax.f32 %v1065_v62, %v1066_v10 }
 0x2f6   :  { %v5584_v15 = vmax.f32 %v1038_v5, %v1039_v11  ;;  %v5586_v16 = vmax.f32 %v1074_v6, %v1075_v12  ;;  %v795_v19 = vpop.f32.mrb[20].mxu1  ;;  %v941_v21 = vpop.f32.mrb[20].mxu0 }
 0x2f7   :  { %v1096_v3 = vmax.f32 %v1095_v63, %v795_v19  ;;  %v1132_v22 = vmax.f32 %v1131_v0, %v941_v21  ;;  %v797_v23 = vpop.f32.mrb[21].mxu1  ;;  %v943_v2 = vpop.f32.mrb[21].mxu0  ;;  %v5356_v21 = vmov 1983009808  }
 0x2f8   :  { %v1187_v24 = vcombine.low %v5580_v13, %v5584_v15  ;;  %v1204_v49 = vcombine.low %v5582_v14, %v5586_v16  ;;  %v1105_v25 = vmax.f32 %v1104_v7, %v797_v23  ;;  %v1141_v17 = vmax.f32 %v1140_v8, %v943_v2  ;;  %v799_v18 = vpop.f32.mrb[22].mxu1  ;;  %v945_v20 = vpop.f32.mrb[22].mxu0  ;;  %v5620_v13 = vld [vmem:[%s5754_s6] sm:$0xff] }
 0x2f9   :  { %v1097_v26 = vmax.f32 %v1096_v3, %v799_v18  ;;  %v1133_v27 = vmax.f32 %v1132_v22, %v945_v20  ;;  %v801_v28 = vpop.f32.mrb[23].mxu1  ;;  %v947_v29 = vpop.f32.mrb[23].mxu0  ;;  %v1190_v3 = vunpack.c.l.s4 %v5356_v21  ;;  %v1192_v22 = vlaneseq }
 0x2fa   :  { %v1106_v30 = vmax.f32 %v1105_v25, %v801_v28  ;;  %v1142_v31 = vmax.f32 %v1141_v17, %v947_v29 }
 0x2fb   :  { %v1098_v32 = vrot.slane %v1097_v26, 4  ;;  %v1134_v33 = vrot.slane %v1133_v27, 4  ;;  %v1191_v29 = vunpack.c.0.s8 %v1190_v3 }
 0x2fc   :  { %v1107_v34 = vrot.slane %v1106_v30, 4  ;;  %v1143_v35 = vrot.slane %v1142_v31, 4 }
 0x2fd   :  { %v1099_v36 = vmax.f32 %v1097_v26, %v1098_v32  ;;  %v1135_v37 = vmax.f32 %v1133_v27, %v1134_v33 }
 0x2fe   :  { %v1108_v38 = vmax.f32 %v1106_v30, %v1107_v34  ;;  %v1144_v39 = vmax.f32 %v1142_v31, %v1143_v35  ;;  %v838_v40 = vpop.f32.mrb[24].mxu1  ;;  %v5604_v30 = vshrl.u32 %v1192_v22, 7 }
 0x2ff   :  { %v1100_v41 = vrot.slane %v1099_v36, 2  ;;  %v1136_v42 = vrot.slane %v1135_v37, 2  ;;  %v840_v43 = vpop.f32.mrb[25].mxu1 }
 0x300   :  { %v1109_v44 = vrot.slane %v1108_v38, 2  ;;  %v1145_v45 = vrot.slane %v1144_v39, 2  ;;  %v842_v46 = vpop.f32.mrb[26].mxu1  ;;  %v5623_v15 = vsub.s32 1, %v5604_v30 }
 0x301   :  { %v1101_v47 = vmax.f32 %v1099_v36, %v1100_v41  ;;  %v1137_v48 = vmax.f32 %v1135_v37, %v1136_v42  ;;  %v1041_v50 = vmax.f32 %v838_v40, %v842_v46  ;;  %v844_v51 = vpop.f32.mrb[27].mxu1  ;;  %v5607_v36 = vsub.s32 %v1191_v29, %v5604_v30 }
 0x302   :  { %v1110_v52 = vmax.f32 %v1108_v38, %v1109_v44  ;;  %v1146_v53 = vmax.f32 %v1144_v39, %v1145_v45  ;;  %v1050_v54 = vmax.f32 %v840_v43, %v844_v51  ;;  %v1409_v21 = vrot.slane %v5620_v13, %v5623_v15 }
 0x303   :  { %v1102_v55 = vrot.slane %v1101_v47, 1  ;;  %v1138_v56 = vrot.slane %v1137_v48, 1  ;;  %v1195_v46 = vrot.slane %v1187_v24, %v5607_v36  ;;  %v1412_v24 = vsub.s32 2, %v5604_v30 }
 0x304   :  { %v1111_v57 = vrot.slane %v1110_v52, 1  ;;  %v1147_v58 = vrot.slane %v1146_v53, 1 }
 0x305   :  { %v5592_v59 = vmax.f32 %v1101_v47, %v1102_v55  ;;  %v5594_v60 = vmax.f32 %v1137_v48, %v1138_v56  ;;  %v1413_v3 = vrot.slane %v5620_v13, %v1412_v24 }
 0x306   :  { %v5596_v61 = vmax.f32 %v1110_v52, %v1111_v57  ;;  %v5598_v62 = vmax.f32 %v1146_v53, %v1147_v58  ;;  %v848_v63 = vpop.f32.mrb[28].mxu1  ;;  %v5615_v58 = vsub.s32 0, %v5604_v30 }
 0x307   :  { %v1042_v0 = vmax.f32 %v1041_v50, %v848_v63  ;;  %v850_v1 = vpop.f32.mrb[29].mxu1 }
 0x308   :  { %v1221_v4 = vcombine.low %v5592_v59, %v5596_v61  ;;  %v1238_v5 = vcombine.low %v5594_v60, %v5598_v62  ;;  %v1051_v6 = vmax.f32 %v1050_v54, %v850_v1  ;;  %v852_v7 = vpop.f32.mrb[30].mxu1  ;;  %v1416_v1 = vsub.s32 3, %v5604_v30  ;;  %v4825_v60 = vld [vmem:[#allocation6 + $0x2a0] ss:$16 sps:$4 sm:$0xff]   ;;  %v4828_v62 = vld [vmem:[#allocation6 + $0x2a8] ss:$16 sps:$4 sm:$0xff]  }
 0x309   :  { %v1043_v8 = vmax.f32 %v1042_v0, %v852_v7  ;;  %v854_v9 = vpop.f32.mrb[31].mxu1 }
 0x30a   :  { %v1052_v10 = vmax.f32 %v1051_v6, %v854_v9  ;;  %v1417_v22 = vrot.slane %v5620_v13, %v1416_v1 }
 0x30b   :  { %v1044_v11 = vrot.slane %v1043_v8, 4 }
 0x30c   :  { %v1053_v12 = vrot.slane %v1052_v10, 4  ;;  %v1435_v29 = vcombine.low %v1413_v3, %v1417_v22 }
 0x30d   :  { %v1045_v19 = vmax.f32 %v1043_v8, %v1044_v11 }
 0x30e   :  { %v1054_v23 = vmax.f32 %v1052_v10, %v1053_v12  ;;  %v858_v2 = vpop.f32.mrb[32].mxu1  ;;  %v1405_v12 = vrot.slane %v5620_v13, %v5615_v58 }
 0x30f   :  { %v1046_v25 = vrot.slane %v1045_v19, 2  ;;  %v860_v17 = vpop.f32.mrb[33].mxu1 }
 0x310   :  { %v1055_v18 = vrot.slane %v1054_v23, 2  ;;  %v862_v20 = vpop.f32.mrb[34].mxu1 }
 0x311   :  { %v1047_v26 = vmax.f32 %v1045_v19, %v1046_v25  ;;  %v1113_v27 = vmax.f32 %v858_v2, %v862_v20  ;;  %v864_v28 = vpop.f32.mrb[35].mxu1 }
 0x312   :  { %v1056_v31 = vmax.f32 %v1054_v23, %v1055_v18  ;;  %v1122_v32 = vmax.f32 %v860_v17, %v864_v28  ;;  %v1434_v28 = vcombine.low %v1405_v12, %v1409_v21 }
 0x313   :  { %v1048_v33 = vrot.slane %v1047_v26, 1 }
 0x314   :  { %v1057_v34 = vrot.slane %v1056_v31, 1 }
 0x315   :  { %v1049_v35 = vmax.f32 %v1047_v26, %v1048_v33  ;;  %v1229_v33 = vrot.slane %v1221_v4, %v5607_v36 }
 0x316   :  { %v1058_v37 = vmax.f32 %v1056_v31, %v1057_v34  ;;  %v868_v38 = vpop.f32.mrb[36].mxu1 }
 0x317   :  { %v1114_v39 = vmax.f32 %v1113_v27, %v868_v38  ;;  %v870_v40 = vpop.f32.mrb[37].mxu1 }
 0x318   :  { %v1188_v41 = vcombine.low %v1049_v35, %v1058_v37  ;;  %v1123_v42 = vmax.f32 %v1122_v32, %v870_v40  ;;  %v872_v43 = vpop.f32.mrb[38].mxu1  ;;  %v1442_v40 = vrot.slane %v1434_v28, %v5607_v36 }
 0x319   :  { %v1115_v44 = vmax.f32 %v1114_v39, %v872_v43  ;;  %v874_v45 = vpop.f32.mrb[39].mxu1 }
 0x31a   :  { %v1202_v47 = vrot.slane %v1188_v41, %v5607_v36  ;;  %v1124_v48 = vmax.f32 %v1123_v42, %v874_v45  ;;  %v1449_v41 = vrot.slane %v1435_v29, %v5607_v36 }
 0x31b   :  { %v1116_v50 = vrot.slane %v1115_v44, 4 }
 0x31c   :  { %v1203_v51 = vcombine.low %v1195_v46, %v1202_v47  ;;  %v1125_v52 = vrot.slane %v1124_v48, 4 }
 0x31d   :  { %v1117_v53 = vmax.f32 %v1115_v44, %v1116_v50 }
 0x31e   :  { %v1126_v54 = vmax.f32 %v1124_v48, %v1125_v52  ;;  %v984_v55 = vpop.f32.mrb[40].mxu1  ;;  %v1450_v48 = vcombine.low %v1442_v40, %v1449_v41  ;;  %v4801_v41 = vld [vmem:[#allocation6 + $0x220] ss:$16 sps:$4 sm:$0xff]  }
 0x31f   :  { %v1118_v56 = vrot.slane %v1117_v53, 2  ;;  %v986_v57 = vpop.f32.mrb[41].mxu1 }
 0x320   :  { %v1127_v63 = vrot.slane %v1126_v54, 2  ;;  %v988_v0 = vpop.f32.mrb[42].mxu1 }
 0x321   :  { %v1119_v6 = vmax.f32 %v1117_v53, %v1118_v56  ;;  %v1077_v7 = vmax.f32 %v984_v55, %v988_v0  ;;  %v990_v8 = vpop.f32.mrb[43].mxu1 }
 0x322   :  { %v1128_v9 = vmax.f32 %v1126_v54, %v1127_v63  ;;  %v1086_v10 = vmax.f32 %v986_v57, %v990_v8 }
 0x323   :  { %v1120_v11 = vrot.slane %v1119_v6, 1 }
 0x324   :  { %v1129_v19 = vrot.slane %v1128_v9, 1 }
 0x325   :  { %v1121_v23 = vmax.f32 %v1119_v6, %v1120_v11 }
 0x326   :  { %v1130_v2 = vmax.f32 %v1128_v9, %v1129_v19  ;;  %v994_v25 = vpop.f32.mrb[44].mxu1 }
 0x327   :  { %v1078_v17 = vmax.f32 %v1077_v7, %v994_v25  ;;  %v996_v18 = vpop.f32.mrb[45].mxu1 }
 0x328   :  { %v1222_v20 = vcombine.low %v1121_v23, %v1130_v2  ;;  %v1087_v26 = vmax.f32 %v1086_v10, %v996_v18  ;;  %v998_v27 = vpop.f32.mrb[46].mxu1 }
 0x329   :  { %v1079_v31 = vmax.f32 %v1078_v17, %v998_v27  ;;  %v1000_v32 = vpop.f32.mrb[47].mxu1  ;;  %v5653_v17 = vrot.slane %v1204_v49, %v5607_v36 }
 0x32a   :  { %v1236_v34 = vrot.slane %v1222_v20, %v5607_v36  ;;  %v1088_v35 = vmax.f32 %v1087_v26, %v1000_v32 }
 0x32b   :  { %v1080_v37 = vrot.slane %v1079_v31, 4 }
 0x32c   :  { %v1237_v38 = vcombine.low %v1229_v33, %v1236_v34  ;;  %v1089_v39 = vrot.slane %v1088_v35, 4  ;;  %v4795_v33 = vld [vmem:[#allocation6 + $0x200] ss:$16 sps:$4 sm:$0xff]   ;;  %v4798_v34 = vld [vmem:[#allocation6 + $0x208] ss:$16 sps:$4 sm:$0xff]  }
 0x32d   :  { %v1081_v42 = vmax.f32 %v1079_v31, %v1080_v37  ;;  %v4803_v37 = vld [vmem:[#allocation6 + $0x224] ss:$16 sps:$4 sm:$0xff]  }
 0x32e   :  { %v1259_v43 = vrot.slane %v1237_v38, 7  ;;  %v1090_v44 = vmax.f32 %v1088_v35, %v1089_v39  ;;  %v1004_v45 = vpop.f32.mrb[48].mxu1  ;;  %v4806_v38 = vld [vmem:[#allocation6 + $0x22c] ss:$16 sps:$4 sm:$0xff]  }
 0x32f   :  { %v1082_v46 = vrot.slane %v1081_v42, 2  ;;  %v1006_v47 = vpop.f32.mrb[49].mxu1 }
 0x330   :  { %v1091_v59 = vrot.slane %v1090_v44, 2  ;;  %v1008_v61 = vpop.f32.mrb[50].mxu1  ;;  %v1261_v4 = vsel %vm1260_vm2, %v1259_v43, %v1203_v51 }
 0x331   :  { %v1083_v50 = vmax.f32 %v1081_v42, %v1082_v46  ;;  %v1149_v52 = vmax.f32 %v1004_v45, %v1008_v61  ;;  %v1010_v53 = vpop.f32.mrb[51].mxu1  ;;  %v1263_v54 = vsel %vm1262_vm3, %v1259_v43, %v1261_v4  ;;  %v1420_v42 = vsub.s32 4, %v5604_v30  ;;  %v4809_v61 = vld [vmem:[#allocation6 + $0x244] ss:$16 sps:$4 sm:$0xff]   ;;  %v4812_v4 = vld [vmem:[#allocation6 + $0x24c] ss:$16 sps:$4 sm:$0xff]  }
 0x332   :  { %v1092_v55 = vmax.f32 %v1090_v44, %v1091_v59  ;;  %v1158_v56 = vmax.f32 %v1006_v47, %v1010_v53  ;;  %v1265_v57 = vsel %vm1264_vm4, %v1259_v43, %v1263_v54  ;;  %v4804_v44 = vld [vmem:[#allocation6 + $0x228] ss:$16 sps:$4 sm:$0xff]   ;;  %v1424_v45 = vsub.s32 5, %v5604_v30  ;;  %v4807_v54 = vld [vmem:[#allocation6 + $0x240] ss:$16 sps:$4 sm:$0xff]  }
 0x333   :  { %v1084_v63 = vrot.slane %v1083_v50, 1  ;;  %v1267_v0 = vsel %vm1266_vm5, %v1259_v43, %v1265_v57  ;;  %v1428_v46 = vsub.s32 6, %v5604_v30  ;;  %v1432_v47 = vsub.s32 7, %v5604_v30  ;;  %v5226_v30 = vld [vmem:[#allocation9 + $0xf4] ss:$8 sps:$4 sm:$0xff]  }
 0x334   :  { %v1093_v6 = vrot.slane %v1092_v55, 1  ;;  %v1470_v7 = vadd.f32 %v1450_v48, %v1267_v0 }
 0x335   :  { %v1085_v8 = vmax.f32 %v1083_v50, %v1084_v63  ;;  %v1429_v57 = vrot.slane %v5620_v13, %v1428_v46  ;;  %v1433_v63 = vrot.slane %v5620_v13, %v1432_v47  ;;  %v4849_v46 = vld [vmem:[#allocation6 + $0x320] ss:$16 sps:$4 sm:$0xff]   ;;  %v4852_v47 = vld [vmem:[#allocation6 + $0x328] ss:$16 sps:$4 sm:$0xff]  }
 0x336   :  { %v1094_v9 = vmax.f32 %v1092_v55, %v1093_v6  ;;  %v1014_v10 = vpop.f32.mrb[52].mxu1  ;;  %v1472_v51 = vmax.f32 %v1470_v7, 0.0  ;;  %v4810_v55 = vld [vmem:[#allocation6 + $0x248] ss:$16 sps:$4 sm:$0xff]   ;;  %v4815_v6 = vld [vmem:[#allocation6 + $0x264] ss:$16 sps:$4 sm:$0xff]  }
 0x337   :  { %v1150_v11 = vmax.f32 %v1149_v52, %v1014_v10  ;;  %v1016_v12 = vpop.f32.mrb[53].mxu1  ;;  %v1421_v52 = vrot.slane %v5620_v13, %v1420_v42  ;;  %v4818_v7 = vld [vmem:[#allocation6 + $0x26c] ss:$16 sps:$4 sm:$0xff]   ;;  %v4813_v10 = vld [vmem:[#allocation6 + $0x260] ss:$16 sps:$4 sm:$0xff]  }
 0x338   :  { %v1205_v19 = vcombine.low %v1085_v8, %v1094_v9  ;;  %v1159_v21 = vmax.f32 %v1158_v56, %v1016_v12  ;;  %v1018_v3 = vpop.f32.mrb[54].mxu1  ;;  %v1483_v22 = vrot.slane %v1472_v51, %v5607_v36  ;;  %v1476_v23 = vcombine.high %v1472_v51, %v1472_v51  ;;  %v4816_v51 = vld [vmem:[#allocation6 + $0x268] ss:$16 sps:$4 sm:$0xff]   ;;  %v4843_v42 = vld [vmem:[#allocation6 + $0x300] ss:$16 sps:$4 sm:$0xff]  }
 0x339   :  { %v1151_v2 = vmax.f32 %v1150_v11, %v1018_v3  ;;  %v1020_v25 = vpop.f32.mrb[55].mxu1  ;;  %v1425_v56 = vrot.slane %v5620_v13, %v1424_v45  ;;  %v1452_v12 = vcombine.low %v1429_v57, %v1433_v63  ;;  %v1246_v13 = vrot.slane %v1238_v5, %v5607_v36  ;;  %v4854_v45 = vld [vmem:[#allocation6 + $0x32c] ss:$16 sps:$4 sm:$0xff]   ;;  %v4867_v57 = vld [vmem:[#allocation6 + $0x380] ss:$16 sps:$4 sm:$0xff]  }
 0x33a   :  { %v5656_v18 = vrot.slane %v1205_v19, %v5607_v36  ;;  %v1160_v20 = vmax.f32 %v1159_v21, %v1020_v25  ;;  %v1491_v26 = vcombine.high %v1483_v22, %v1483_v22  ;;  %v5659_v28 = vrot.slane %v1476_v23, %v5607_v36  ;;  %v4821_v19 = vld [vmem:[#allocation6 + $0x284] ss:$16 sps:$4 sm:$0xff]   ;;  %v4824_v21 = vld [vmem:[#allocation6 + $0x28c] ss:$16 sps:$4 sm:$0xff]   ;;  %v4819_v23 = vld [vmem:[#allocation6 + $0x280] ss:$16 sps:$4 sm:$0xff]  }
 0x33b   :  { %v1152_v27 = vrot.slane %v1151_v2, 4  ;;  %v1518_v14 = vpack.c.bf16 %v1483_v22, %v1483_v22  ;;  %v1451_v11 = vcombine.low %v1421_v52, %v1425_v56  ;;  %v4866_v52 = vld [vmem:[#allocation6 + $0x36c] ss:$16 sps:$4 sm:$0xff]   ;;  %v4870_v63 = vld [vmem:[#allocation6 + $0x388] ss:$16 sps:$4 sm:$0xff]  }
 0x33c   :  { %v1220_v29 = vcombine.low %v5653_v17, %v5656_v18  ;;  %v1161_v31 = vrot.slane %v1160_v20, 4  ;;  %v1519_v32 = vpack.c.bf16 %v1491_v26, %v1491_v26  ;;  %v1492_v16 = vcombine.high %v5659_v28, %v5659_v28  ;;  %v4827_v26 = vld [vmem:[#allocation6 + $0x2a4] ss:$16 sps:$4 sm:$0xff]   ;;  %v4842_v18 = vld [vmem:[#allocation6 + $0x2ec] ss:$16 sps:$4 sm:$0xff]  }
 0x33d   :  { %v1153_v35 = vmax.f32 %v1151_v2, %v1152_v27  ;;  %v4822_v2 = vld [vmem:[#allocation6 + $0x288] ss:$16 sps:$4 sm:$0xff]   ;;  %v1459_v25 = vrot.slane %v1451_v11, %v5607_v36  ;;  %v4830_v27 = vld [vmem:[#allocation6 + $0x2ac] ss:$16 sps:$4 sm:$0xff]   ;;  %v4839_v17 = vld [vmem:[#allocation6 + $0x2e4] ss:$16 sps:$4 sm:$0xff]  }
 0x33e   :  { %v1162_v49 = vmax.f32 %v1160_v20, %v1161_v31  ;;  %3116 = vmatprep.mubr.bf16.mxu0 %v1519_v32  ;;  %3280 = vmatprep.mubr.bf16.mxu1 %v1519_v32  ;;  %v1521_v40 = vpack.c.bf16 %v1492_v16, %v1492_v16  ;;  %v1466_v20 = vrot.slane %v1452_v12, %v5607_v36  ;;  %v4872_v56 = vld [vmem:[#allocation6 + $0x38c] ss:$16 sps:$4 sm:$0xff]   ;;  %v4879_v11 = vld [vmem:[#allocation6 + $0x3c0] ss:$16 sps:$4 sm:$0xff]   ;;  %v4882_v12 = vld [vmem:[#allocation6 + $0x3c8] ss:$16 sps:$4 sm:$0xff]  }
 0x33f   :  { %v1154_v39 = vrot.slane %v1153_v35, 2  ;;  %3117 = vmatmul.mubr.bf16.vlgmr.msra.gmra.mrb[24].mxu0 %v1518_v14  ;;  %3281 = vmatmul.mubr.bf16.vlgmr.msra.gmra.mrb[56].mxu1 %v1518_v14 }
 0x340   :  { %v1163_v43 = vrot.slane %v1162_v49, 2  ;;  %3126 = vmatpush1.bf16.msra.mxu0 %v4795_v33  ;;  %3290 = vmatpush1.bf16.msra.mxu1 %v4798_v34  ;;  %v1467_v32 = vcombine.low %v1459_v25, %v1466_v20  ;;  %v4833_v33 = vld [vmem:[#allocation6 + $0x2c4] ss:$16 sps:$4 sm:$0xff]   ;;  %v4836_v34 = vld [vmem:[#allocation6 + $0x2cc] ss:$16 sps:$4 sm:$0xff]  }
 0x341   :  { %v1155_v59 = vmax.f32 %v1153_v35, %v1154_v39  ;;  %3157 = vmatprep.mubr.bf16.mxu0 %v1521_v40  ;;  %3321 = vmatprep.mubr.bf16.mxu1 %v1521_v40  ;;  %v4840_v39 = vld [vmem:[#allocation6 + $0x2e8] ss:$16 sps:$4 sm:$0xff]   ;;  %v4845_v40 = vld [vmem:[#allocation6 + $0x304] ss:$16 sps:$4 sm:$0xff]   ;;  %v4891_v20 = vld [vmem:[#allocation6 + $0x400] ss:$16 sps:$4 sm:$0xff]  }
 0x342   :  { %v1164_v48 = vmax.f32 %v1162_v49, %v1163_v43  ;;  %3127 = vmatprep.subr.bf16.mxu0 %v4803_v37  ;;  %3291 = vmatprep.subr.bf16.mxu1 %v4806_v38  ;;  %v4831_v49 = vld [vmem:[#allocation6 + $0x2c0] ss:$16 sps:$4 sm:$0xff]   ;;  %v4834_v37 = vld [vmem:[#allocation6 + $0x2c8] ss:$16 sps:$4 sm:$0xff]  }
 0x343   :  { %v1156_v50 = vrot.slane %v1155_v59, 1  ;;  %v4846_v43 = vld [vmem:[#allocation6 + $0x308] ss:$16 sps:$4 sm:$0xff]  }
 0x344   :  { %v1165_v53 = vrot.slane %v1164_v48, 1  ;;  %3128 = vmatpush1.bf16.msra.mxu0 %v4801_v41  ;;  %3292 = vmatpush1.bf16.msra.mxu1 %v4804_v44  ;;  %v4848_v41 = vld [vmem:[#allocation6 + $0x30c] ss:$16 sps:$4 sm:$0xff]   ;;  %v4851_v44 = vld [vmem:[#allocation6 + $0x324] ss:$16 sps:$4 sm:$0xff]  }
 0x345   :  { %v1157_v0 = vmax.f32 %v1155_v59, %v1156_v50  ;;  %3129 = vmatprep.subr.bf16.mxu0 %v4809_v61  ;;  %3293 = vmatprep.subr.bf16.mxu1 %v4812_v4  ;;  %v4857_v59 = vld [vmem:[#allocation6 + $0x344] ss:$16 sps:$4 sm:$0xff]   ;;  %v4860_v61 = vld [vmem:[#allocation6 + $0x34c] ss:$16 sps:$4 sm:$0xff]   ;;  %v4855_v4 = vld [vmem:[#allocation6 + $0x340] ss:$16 sps:$4 sm:$0xff]  }
 0x346   :  { %v1166_v8 = vmax.f32 %v1164_v48, %v1165_v53  ;;  %v4858_v48 = vld [vmem:[#allocation6 + $0x348] ss:$16 sps:$4 sm:$0xff]   ;;  %v4863_v50 = vld [vmem:[#allocation6 + $0x364] ss:$16 sps:$4 sm:$0xff]   ;;  %v4861_v53 = vld [vmem:[#allocation6 + $0x360] ss:$16 sps:$4 sm:$0xff]  }
 0x348   :  { %v1239_v9 = vcombine.low %v1157_v0, %v1166_v8  ;;  %3130 = vmatpush1.bf16.msra.mxu0 %v4807_v54  ;;  %3294 = vmatpush1.bf16.msra.mxu1 %v4810_v55  ;;  %v4864_v54 = vld [vmem:[#allocation6 + $0x368] ss:$16 sps:$4 sm:$0xff]   ;;  %v4869_v55 = vld [vmem:[#allocation6 + $0x384] ss:$16 sps:$4 sm:$0xff]  }
 0x349   :  { %3131 = vmatprep.subr.bf16.mxu0 %v4815_v6  ;;  %3295 = vmatprep.subr.bf16.mxu1 %v4818_v7  ;;  %v4875_v0 = vld [vmem:[#allocation6 + $0x3a4] ss:$16 sps:$4 sm:$0xff]   ;;  %v4878_v6 = vld [vmem:[#allocation6 + $0x3ac] ss:$16 sps:$4 sm:$0xff]   ;;  %v4873_v7 = vld [vmem:[#allocation6 + $0x3a0] ss:$16 sps:$4 sm:$0xff]  }
 0x34a   :  { %v1253_v3 = vrot.slane %v1239_v9, %v5607_v36  ;;  %v4876_v8 = vld [vmem:[#allocation6 + $0x3a8] ss:$16 sps:$4 sm:$0xff]   ;;  %v4881_v9 = vld [vmem:[#allocation6 + $0x3c4] ss:$16 sps:$4 sm:$0xff]  }
 0x34c   :  { %v1254_v22 = vcombine.low %v1246_v13, %v1253_v3  ;;  %3132 = vmatpush1.bf16.msra.mxu0 %v4813_v10  ;;  %3296 = vmatpush1.bf16.msra.mxu1 %v4816_v51  ;;  %v4884_v10 = vld [vmem:[#allocation6 + $0x3cc] ss:$16 sps:$4 sm:$0xff]   ;;  %v4885_v3 = vld [vmem:[#allocation6 + $0x3e0] ss:$16 sps:$4 sm:$0xff]  }
 0x34d   :  { %3133 = vmatprep.subr.bf16.mxu0 %v4821_v19  ;;  %3297 = vmatprep.subr.bf16.mxu1 %v4824_v21  ;;  %v4887_v19 = vld [vmem:[#allocation6 + $0x3e4] ss:$16 sps:$4 sm:$0xff]   ;;  %v4890_v21 = vld [vmem:[#allocation6 + $0x3ec] ss:$16 sps:$4 sm:$0xff]  }
 0x34e   :  { %v1270_v31 = vrot.slane %v1254_v22, 7  ;;  %v4888_v22 = vld [vmem:[#allocation6 + $0x3e8] ss:$16 sps:$4 sm:$0xff]  }
 0x350   :  { %3134 = vmatpush1.bf16.msra.mxu0 %v4819_v23  ;;  %3298 = vmatpush1.bf16.msra.mxu1 %v4822_v2  ;;  %v1271_v5 = vsel %vm1260_vm2, %v1270_v31, %v1220_v29  ;;  %v4837_v29 = vld [vmem:[#allocation6 + $0x2e0] ss:$16 sps:$4 sm:$0xff]   ;;  %v4893_v23 = vld [vmem:[#allocation6 + $0x404] ss:$16 sps:$4 sm:$0xff]   ;;  %v4896_v2 = vld [vmem:[#allocation6 + $0x40c] ss:$16 sps:$4 sm:$0xff]  }
 0x351   :  { %3135 = vmatprep.subr.bf16.mxu0 %v4827_v26  ;;  %3299 = vmatprep.subr.bf16.mxu1 %v4830_v27  ;;  %v1272_v35 = vsel %vm1262_vm3, %v1270_v31, %v1271_v5  ;;  %v1520_v26 = vpack.c.bf16 %v5659_v28, %v5659_v28  ;;  %v4894_v27 = vld [vmem:[#allocation6 + $0x408] ss:$16 sps:$4 sm:$0xff]   ;;  %v4897_v5 = vld [vmem:[#allocation6 + $0x420] ss:$16 sps:$4 sm:$0xff]  }
 0x352   :  { %v1273_v14 = vsel %vm1264_vm4, %v1270_v31, %v1272_v35  ;;  %v4903_v28 = vld [vmem:[#allocation6 + $0x440] ss:$16 sps:$4 sm:$0xff]   ;;  %v4906_v35 = vld [vmem:[#allocation6 + $0x448] ss:$16 sps:$4 sm:$0xff]  }
 0x353   :  { %v1274_v16 = vsel %vm1266_vm5, %v1270_v31, %v1273_v14  ;;  %v4911_v14 = vld [vmem:[#allocation6 + $0x464] ss:$16 sps:$4 sm:$0xff]  }
 0x354   :  { %3136 = vmatpush1.bf16.msra.mxu0 %v4825_v60  ;;  %3300 = vmatpush1.bf16.msra.mxu1 %v4828_v62  ;;  %v1471_v38 = vadd.f32 %v1467_v32, %v1274_v16  ;;  %v4899_v60 = vld [vmem:[#allocation6 + $0x424] ss:$16 sps:$4 sm:$0xff]   ;;  %v4902_v62 = vld [vmem:[#allocation6 + $0x42c] ss:$16 sps:$4 sm:$0xff]   ;;  %v4900_v32 = vld [vmem:[#allocation6 + $0x428] ss:$16 sps:$4 sm:$0xff]  }
 0x355   :  { %3137 = vmatprep.subr.bf16.mxu0 %v4833_v33  ;;  %3301 = vmatprep.subr.bf16.mxu1 %v4836_v34  ;;  %v4905_v33 = vld [vmem:[#allocation6 + $0x444] ss:$16 sps:$4 sm:$0xff]   ;;  %v4908_v34 = vld [vmem:[#allocation6 + $0x44c] ss:$16 sps:$4 sm:$0xff]  }
 0x356   :  { %v5687_v51 = vmax.f32 %v1471_v38, 0.0  ;;  %v4914_v16 = vld [vmem:[#allocation6 + $0x46c] ss:$16 sps:$4 sm:$0xff]   ;;  %v4917_v38 = vld [vmem:[#allocation6 + $0x484] ss:$16 sps:$4 sm:$0xff]  }
 0x358   :  { %3138 = vmatpush1.bf16.msra.mxu0 %v4831_v49  ;;  %3302 = vmatpush1.bf16.msra.mxu1 %v4834_v37  ;;  %v5691_v13 = vrot.slane %v5687_v51, %v5607_v36  ;;  %v4909_v49 = vld [vmem:[#allocation6 + $0x460] ss:$16 sps:$4 sm:$0xff]   ;;  %v4912_v37 = vld [vmem:[#allocation6 + $0x468] ss:$16 sps:$4 sm:$0xff]  }
 0x359   :  { %3139 = vmatprep.subr.bf16.mxu0 %v4839_v17  ;;  %3303 = vmatprep.subr.bf16.mxu1 %v4842_v18  ;;  %v4920_v17 = vld [vmem:[#allocation6 + $0x48c] ss:$16 sps:$4 sm:$0xff]   ;;  %v4915_v18 = vld [vmem:[#allocation6 + $0x480] ss:$16 sps:$4 sm:$0xff]  }
 0x35a   :  { %v1508_v25 = vcombine.high %v5691_v13, %v5691_v13 }
 0x35c   :  { %3140 = vmatpush1.bf16.msra.mxu0 %v4837_v29  ;;  %3304 = vmatpush1.bf16.msra.mxu1 %v4840_v39  ;;  %v1523_v31 = vpack.c.bf16 %v1508_v25, %v1508_v25  ;;  %v4918_v29 = vld [vmem:[#allocation6 + $0x488] ss:$16 sps:$4 sm:$0xff]   ;;  %v4923_v39 = vld [vmem:[#allocation6 + $0x4a4] ss:$16 sps:$4 sm:$0xff]  }
 0x35d   :  { %3141 = vmatprep.subr.bf16.mxu0 %v4845_v40  ;;  %3305 = vmatprep.subr.bf16.mxu1 %v4848_v41  ;;  %v4926_v40 = vld [vmem:[#allocation6 + $0x4ac] ss:$16 sps:$4 sm:$0xff]   ;;  %v4921_v41 = vld [vmem:[#allocation6 + $0x4a0] ss:$16 sps:$4 sm:$0xff]   ;;  %v4972_v25 = vld [vmem:[#allocation6 + $0x5a8] ss:$16 sps:$4 sm:$0xff]  }
 0x360   :  { %3142 = vmatpush1.bf16.msra.mxu0 %v4843_v42  ;;  %3306 = vmatpush1.bf16.msra.mxu1 %v4846_v43  ;;  %v4924_v42 = vld [vmem:[#allocation6 + $0x4a8] ss:$16 sps:$4 sm:$0xff]   ;;  %v4929_v43 = vld [vmem:[#allocation6 + $0x4c4] ss:$16 sps:$4 sm:$0xff]  }
 0x361   :  { %3143 = vmatprep.subr.bf16.mxu0 %v4851_v44  ;;  %3307 = vmatprep.subr.bf16.mxu1 %v4854_v45  ;;  %v4932_v44 = vld [vmem:[#allocation6 + $0x4cc] ss:$16 sps:$4 sm:$0xff]   ;;  %v4927_v45 = vld [vmem:[#allocation6 + $0x4c0] ss:$16 sps:$4 sm:$0xff]  }
 0x364   :  { %3144 = vmatpush1.bf16.msra.mxu0 %v4849_v46  ;;  %3308 = vmatpush1.bf16.msra.mxu1 %v4852_v47  ;;  %v4930_v46 = vld [vmem:[#allocation6 + $0x4c8] ss:$16 sps:$4 sm:$0xff]   ;;  %v4935_v47 = vld [vmem:[#allocation6 + $0x4e4] ss:$16 sps:$4 sm:$0xff]  }
 0x365   :  { %3145 = vmatprep.subr.bf16.mxu0 %v4857_v59  ;;  %3309 = vmatprep.subr.bf16.mxu1 %v4860_v61  ;;  %v4938_v59 = vld [vmem:[#allocation6 + $0x4ec] ss:$16 sps:$4 sm:$0xff]   ;;  %v4933_v61 = vld [vmem:[#allocation6 + $0x4e0] ss:$16 sps:$4 sm:$0xff]  }
 0x368   :  { %3146 = vmatpush1.bf16.msra.mxu0 %v4855_v4  ;;  %3310 = vmatpush1.bf16.msra.mxu1 %v4858_v48  ;;  %v4936_v4 = vld [vmem:[#allocation6 + $0x4e8] ss:$16 sps:$4 sm:$0xff]   ;;  %v4941_v48 = vld [vmem:[#allocation6 + $0x504] ss:$16 sps:$4 sm:$0xff]  }
 0x369   :  { %3147 = vmatprep.subr.bf16.mxu0 %v4863_v50  ;;  %3311 = vmatprep.subr.bf16.mxu1 %v4866_v52  ;;  %v4944_v50 = vld [vmem:[#allocation6 + $0x50c] ss:$16 sps:$4 sm:$0xff]   ;;  %v4939_v52 = vld [vmem:[#allocation6 + $0x500] ss:$16 sps:$4 sm:$0xff]  }
 0x36c   :  { %3148 = vmatpush1.bf16.msra.mxu0 %v4861_v53  ;;  %3312 = vmatpush1.bf16.msra.mxu1 %v4864_v54  ;;  %v4942_v53 = vld [vmem:[#allocation6 + $0x508] ss:$16 sps:$4 sm:$0xff]   ;;  %v4947_v54 = vld [vmem:[#allocation6 + $0x524] ss:$16 sps:$4 sm:$0xff]  }
 0x36d   :  { %3149 = vmatprep.subr.bf16.mxu0 %v4869_v55  ;;  %3313 = vmatprep.subr.bf16.mxu1 %v4872_v56  ;;  %v4950_v55 = vld [vmem:[#allocation6 + $0x52c] ss:$16 sps:$4 sm:$0xff]   ;;  %v4945_v56 = vld [vmem:[#allocation6 + $0x520] ss:$16 sps:$4 sm:$0xff]  }
 0x370   :  { %3150 = vmatpush1.bf16.msra.mxu0 %v4867_v57  ;;  %3314 = vmatpush1.bf16.msra.mxu1 %v4870_v63  ;;  %v4948_v57 = vld [vmem:[#allocation6 + $0x528] ss:$16 sps:$4 sm:$0xff]   ;;  %v4953_v63 = vld [vmem:[#allocation6 + $0x544] ss:$16 sps:$4 sm:$0xff]  }
 0x371   :  { %3151 = vmatprep.subr.bf16.mxu0 %v4875_v0  ;;  %3315 = vmatprep.subr.bf16.mxu1 %v4878_v6  ;;  %v4956_v0 = vld [vmem:[#allocation6 + $0x54c] ss:$16 sps:$4 sm:$0xff]   ;;  %v4951_v6 = vld [vmem:[#allocation6 + $0x540] ss:$16 sps:$4 sm:$0xff]  }
 0x374   :  { %3152 = vmatpush1.bf16.msra.mxu0 %v4873_v7  ;;  %3316 = vmatpush1.bf16.msra.mxu1 %v4876_v8  ;;  %v4954_v7 = vld [vmem:[#allocation6 + $0x548] ss:$16 sps:$4 sm:$0xff]   ;;  %v4959_v8 = vld [vmem:[#allocation6 + $0x564] ss:$16 sps:$4 sm:$0xff]  }
 0x375   :  { %3153 = vmatprep.subr.bf16.mxu0 %v4881_v9  ;;  %3317 = vmatprep.subr.bf16.mxu1 %v4884_v10  ;;  %v4962_v9 = vld [vmem:[#allocation6 + $0x56c] ss:$16 sps:$4 sm:$0xff]   ;;  %v4957_v10 = vld [vmem:[#allocation6 + $0x560] ss:$16 sps:$4 sm:$0xff]  }
 0x378   :  { %3154 = vmatpush1.bf16.msra.mxu0 %v4879_v11  ;;  %3318 = vmatpush1.bf16.msra.mxu1 %v4882_v12  ;;  %v4960_v11 = vld [vmem:[#allocation6 + $0x568] ss:$16 sps:$4 sm:$0xff]   ;;  %v4965_v12 = vld [vmem:[#allocation6 + $0x584] ss:$16 sps:$4 sm:$0xff]  }
 0x379   :  { %3155 = vmatprep.subr.bf16.mxu0 %v4887_v19  ;;  %3319 = vmatprep.subr.bf16.mxu1 %v4890_v21  ;;  %v4968_v19 = vld [vmem:[#allocation6 + $0x58c] ss:$16 sps:$4 sm:$0xff]   ;;  %v4963_v21 = vld [vmem:[#allocation6 + $0x580] ss:$16 sps:$4 sm:$0xff]  }
 0x37c   :  { %3156 = vmatpush1.bf16.msra.mxu0 %v4885_v3  ;;  %3320 = vmatpush1.bf16.msra.mxu1 %v4888_v22  ;;  %v4966_v3 = vld [vmem:[#allocation6 + $0x588] ss:$16 sps:$4 sm:$0xff]   ;;  %v4971_v22 = vld [vmem:[#allocation6 + $0x5a4] ss:$16 sps:$4 sm:$0xff]  }
 0x37d   :  { %3166 = vmatprep.subr.bf16.mxu0 %v4893_v23  ;;  %3330 = vmatprep.subr.bf16.mxu1 %v4896_v2  ;;  %v4974_v23 = vld [vmem:[#allocation6 + $0x5ac] ss:$16 sps:$4 sm:$0xff]   ;;  %v4969_v2 = vld [vmem:[#allocation6 + $0x5a0] ss:$16 sps:$4 sm:$0xff]  }
 0x37f   :  { %3158 = vmatmul.mubr.bf16.vlgmr.msra.gmra.mrb[24].mxu0 %v1520_v26  ;;  %3322 = vmatmul.mubr.bf16.vlgmr.msra.gmra.mrb[56].mxu1 %v1520_v26  ;;  %v4980_v26 = vld [vmem:[#allocation6 + $0x5cc] ss:$16 sps:$4 sm:$0xff]  }
 0x380   :  { %3167 = vmatpush1.bf16.msra.mxu0 %v4891_v20  ;;  %3198 = vmatprep.mubr.bf16.mxu0 %v1523_v31  ;;  %v4977_v20 = vld [vmem:[#allocation6 + $0x5c4] ss:$16 sps:$4 sm:$0xff]  }
 0x381   :  { %3331 = vmatpush1.bf16.msra.mxu1 %v4894_v27  ;;  %3362 = vmatprep.mubr.bf16.mxu1 %v1523_v31  ;;  %v1493_v27 = vcombine.high %v5687_v51, %v5687_v51  ;;  %v4975_v31 = vld [vmem:[#allocation6 + $0x5c0] ss:$16 sps:$4 sm:$0xff]  }
 0x382   :  { %3168 = vmatprep.subr.bf16.mxu0 %v4899_v60  ;;  %3332 = vmatprep.subr.bf16.mxu1 %v4902_v62  ;;  %v4978_v60 = vld [vmem:[#allocation6 + $0x5c8] ss:$16 sps:$4 sm:$0xff]   ;;  %v4983_v62 = vld [vmem:[#allocation6 + $0x5e4] ss:$16 sps:$4 sm:$0xff]  }
 0x384   :  { %3169 = vmatpush1.bf16.msra.mxu0 %v4897_v5  ;;  %v4986_v5 = vld [vmem:[#allocation6 + $0x5ec] ss:$16 sps:$4 sm:$0xff]  }
 0x385   :  { %3333 = vmatpush1.bf16.msra.mxu1 %v4900_v32  ;;  %3170 = vmatprep.subr.bf16.mxu0 %v4905_v33  ;;  %v5700_v32 = vrot.slane %v1493_v27, %v5607_v36  ;;  %v4981_v33 = vld [vmem:[#allocation6 + $0x5e0] ss:$16 sps:$4 sm:$0xff]   ;;  %v4990_v36 = vld [vmem:[#allocation6 + $0x608] ss:$16 sps:$4 sm:$0xff]   ;;  %v5061_v27 = vld [vmem:[#allocation6 + $0x784] ss:$16 sps:$4 sm:$0xff]  }
 0x386   :  { %3334 = vmatprep.subr.bf16.mxu1 %v4908_v34  ;;  %v4984_v34 = vld [vmem:[#allocation6 + $0x5e8] ss:$16 sps:$4 sm:$0xff]  }
 0x387   :  { %v1509_v51 = vcombine.high %v5700_v32, %v5700_v32 }
 0x388   :  { %3171 = vmatpush1.bf16.msra.mxu0 %v4903_v28  ;;  %v4989_v28 = vld [vmem:[#allocation6 + $0x604] ss:$16 sps:$4 sm:$0xff]  }
 0x389   :  { %3335 = vmatpush1.bf16.msra.mxu1 %v4906_v35  ;;  %3172 = vmatprep.subr.bf16.mxu0 %v4911_v14  ;;  %v4992_v35 = vld [vmem:[#allocation6 + $0x60c] ss:$16 sps:$4 sm:$0xff]   ;;  %v4987_v14 = vld [vmem:[#allocation6 + $0x600] ss:$16 sps:$4 sm:$0xff]  }
 0x38a   :  { %3336 = vmatprep.subr.bf16.mxu1 %v4914_v16  ;;  %v1522_v16 = vpack.c.bf16 %v5691_v13, %v5691_v13  ;;  %v4999_v13 = vld [vmem:[#allocation6 + $0x640] ss:$16 sps:$4 sm:$0xff]  }
 0x38c   :  { %3173 = vmatpush1.bf16.msra.mxu0 %v4909_v49  ;;  %v4995_v49 = vld [vmem:[#allocation6 + $0x624] ss:$16 sps:$4 sm:$0xff]  }
 0x38d   :  { %3337 = vmatpush1.bf16.msra.mxu1 %v4912_v37  ;;  %3174 = vmatprep.subr.bf16.mxu0 %v4917_v38  ;;  %v1525_v37 = vpack.c.bf16 %v1509_v51, %v1509_v51  ;;  %v4998_v38 = vld [vmem:[#allocation6 + $0x62c] ss:$16 sps:$4 sm:$0xff]  }
 0x38e   :  { %3338 = vmatprep.subr.bf16.mxu1 %v4920_v17  ;;  %v4993_v17 = vld [vmem:[#allocation6 + $0x620] ss:$16 sps:$4 sm:$0xff]   ;;  %v5076_v51 = vld [vmem:[#allocation6 + $0x7cc] ss:$16 sps:$4 sm:$0xff]  }
 0x390   :  { %3175 = vmatpush1.bf16.msra.mxu0 %v4915_v18  ;;  %v4996_v18 = vld [vmem:[#allocation6 + $0x628] ss:$16 sps:$4 sm:$0xff]  }
 0x391   :  { %3339 = vmatpush1.bf16.msra.mxu1 %v4918_v29  ;;  %3176 = vmatprep.subr.bf16.mxu0 %v4923_v39  ;;  %v5001_v29 = vld [vmem:[#allocation6 + $0x644] ss:$16 sps:$4 sm:$0xff]   ;;  %v5004_v39 = vld [vmem:[#allocation6 + $0x64c] ss:$16 sps:$4 sm:$0xff]  }
 0x392   :  { %3340 = vmatprep.subr.bf16.mxu1 %v4926_v40  ;;  %v5002_v40 = vld [vmem:[#allocation6 + $0x648] ss:$16 sps:$4 sm:$0xff]  }
 0x394   :  { %3177 = vmatpush1.bf16.msra.mxu0 %v4921_v41  ;;  %v5007_v41 = vld [vmem:[#allocation6 + $0x664] ss:$16 sps:$4 sm:$0xff]  }
 0x395   :  { %3341 = vmatpush1.bf16.msra.mxu1 %v4924_v42  ;;  %3178 = vmatprep.subr.bf16.mxu0 %v4929_v43  ;;  %v5010_v42 = vld [vmem:[#allocation6 + $0x66c] ss:$16 sps:$4 sm:$0xff]   ;;  %v5005_v43 = vld [vmem:[#allocation6 + $0x660] ss:$16 sps:$4 sm:$0xff]  }
 0x396   :  { %3342 = vmatprep.subr.bf16.mxu1 %v4932_v44  ;;  %v5008_v44 = vld [vmem:[#allocation6 + $0x668] ss:$16 sps:$4 sm:$0xff]  }
 0x398   :  { %3179 = vmatpush1.bf16.msra.mxu0 %v4927_v45  ;;  %v5013_v45 = vld [vmem:[#allocation6 + $0x684] ss:$16 sps:$4 sm:$0xff]  }
 0x399   :  { %3343 = vmatpush1.bf16.msra.mxu1 %v4930_v46  ;;  %3180 = vmatprep.subr.bf16.mxu0 %v4935_v47  ;;  %v5016_v46 = vld [vmem:[#allocation6 + $0x68c] ss:$16 sps:$4 sm:$0xff]   ;;  %v5011_v47 = vld [vmem:[#allocation6 + $0x680] ss:$16 sps:$4 sm:$0xff]  }
 0x39a   :  { %3344 = vmatprep.subr.bf16.mxu1 %v4938_v59  ;;  %v5014_v59 = vld [vmem:[#allocation6 + $0x688] ss:$16 sps:$4 sm:$0xff]  }
 0x39c   :  { %3181 = vmatpush1.bf16.msra.mxu0 %v4933_v61  ;;  %v5019_v61 = vld [vmem:[#allocation6 + $0x6a4] ss:$16 sps:$4 sm:$0xff]  }
 0x39d   :  { %3345 = vmatpush1.bf16.msra.mxu1 %v4936_v4  ;;  %3182 = vmatprep.subr.bf16.mxu0 %v4941_v48  ;;  %v5022_v4 = vld [vmem:[#allocation6 + $0x6ac] ss:$16 sps:$4 sm:$0xff]   ;;  %v5017_v48 = vld [vmem:[#allocation6 + $0x6a0] ss:$16 sps:$4 sm:$0xff]  }
 0x39e   :  { %3346 = vmatprep.subr.bf16.mxu1 %v4944_v50  ;;  %v5020_v50 = vld [vmem:[#allocation6 + $0x6a8] ss:$16 sps:$4 sm:$0xff]  }
 0x3a0   :  { %3183 = vmatpush1.bf16.msra.mxu0 %v4939_v52  ;;  %v5025_v52 = vld [vmem:[#allocation6 + $0x6c4] ss:$16 sps:$4 sm:$0xff]  }
 0x3a1   :  { %3347 = vmatpush1.bf16.msra.mxu1 %v4942_v53  ;;  %3184 = vmatprep.subr.bf16.mxu0 %v4947_v54  ;;  %v5028_v53 = vld [vmem:[#allocation6 + $0x6cc] ss:$16 sps:$4 sm:$0xff]   ;;  %v5023_v54 = vld [vmem:[#allocation6 + $0x6c0] ss:$16 sps:$4 sm:$0xff]  }
 0x3a2   :  { %3348 = vmatprep.subr.bf16.mxu1 %v4950_v55  ;;  %v5026_v55 = vld [vmem:[#allocation6 + $0x6c8] ss:$16 sps:$4 sm:$0xff]  }
 0x3a4   :  { %3185 = vmatpush1.bf16.msra.mxu0 %v4945_v56  ;;  %v5031_v56 = vld [vmem:[#allocation6 + $0x6e4] ss:$16 sps:$4 sm:$0xff]  }
 0x3a5   :  { %3349 = vmatpush1.bf16.msra.mxu1 %v4948_v57  ;;  %3186 = vmatprep.subr.bf16.mxu0 %v4953_v63  ;;  %v5034_v57 = vld [vmem:[#allocation6 + $0x6ec] ss:$16 sps:$4 sm:$0xff]   ;;  %v5029_v63 = vld [vmem:[#allocation6 + $0x6e0] ss:$16 sps:$4 sm:$0xff]  }
 0x3a6   :  { %3350 = vmatprep.subr.bf16.mxu1 %v4956_v0  ;;  %v5032_v0 = vld [vmem:[#allocation6 + $0x6e8] ss:$16 sps:$4 sm:$0xff]  }
 0x3a8   :  { %3187 = vmatpush1.bf16.msra.mxu0 %v4951_v6  ;;  %v5037_v6 = vld [vmem:[#allocation6 + $0x704] ss:$16 sps:$4 sm:$0xff]  }
 0x3a9   :  { %3351 = vmatpush1.bf16.msra.mxu1 %v4954_v7  ;;  %3188 = vmatprep.subr.bf16.mxu0 %v4959_v8  ;;  %v5040_v7 = vld [vmem:[#allocation6 + $0x70c] ss:$16 sps:$4 sm:$0xff]   ;;  %v5035_v8 = vld [vmem:[#allocation6 + $0x700] ss:$16 sps:$4 sm:$0xff]  }
 0x3aa   :  { %3352 = vmatprep.subr.bf16.mxu1 %v4962_v9  ;;  %v5038_v9 = vld [vmem:[#allocation6 + $0x708] ss:$16 sps:$4 sm:$0xff]  }
 0x3ac   :  { %3189 = vmatpush1.bf16.msra.mxu0 %v4957_v10  ;;  %v5043_v10 = vld [vmem:[#allocation6 + $0x724] ss:$16 sps:$4 sm:$0xff]  }
 0x3ad   :  { %3353 = vmatpush1.bf16.msra.mxu1 %v4960_v11  ;;  %3190 = vmatprep.subr.bf16.mxu0 %v4965_v12  ;;  %v5046_v11 = vld [vmem:[#allocation6 + $0x72c] ss:$16 sps:$4 sm:$0xff]   ;;  %v5041_v12 = vld [vmem:[#allocation6 + $0x720] ss:$16 sps:$4 sm:$0xff]  }
 0x3ae   :  { %3354 = vmatprep.subr.bf16.mxu1 %v4968_v19  ;;  %v5044_v19 = vld [vmem:[#allocation6 + $0x728] ss:$16 sps:$4 sm:$0xff]  }
 0x3b0   :  { %3191 = vmatpush1.bf16.msra.mxu0 %v4963_v21  ;;  %v5049_v21 = vld [vmem:[#allocation6 + $0x744] ss:$16 sps:$4 sm:$0xff]  }
 0x3b1   :  { %3355 = vmatpush1.bf16.msra.mxu1 %v4966_v3  ;;  %3192 = vmatprep.subr.bf16.mxu0 %v4971_v22  ;;  %v5052_v3 = vld [vmem:[#allocation6 + $0x74c] ss:$16 sps:$4 sm:$0xff]   ;;  %v5047_v22 = vld [vmem:[#allocation6 + $0x740] ss:$16 sps:$4 sm:$0xff]  }
 0x3b2   :  { %3356 = vmatprep.subr.bf16.mxu1 %v4974_v23  ;;  %v5050_v23 = vld [vmem:[#allocation6 + $0x748] ss:$16 sps:$4 sm:$0xff]  }
 0x3b4   :  { %3193 = vmatpush1.bf16.msra.mxu0 %v4969_v2  ;;  %v5055_v2 = vld [vmem:[#allocation6 + $0x764] ss:$16 sps:$4 sm:$0xff]  }
 0x3b5   :  { %3357 = vmatpush1.bf16.msra.mxu1 %v4972_v25  ;;  %3194 = vmatprep.subr.bf16.mxu0 %v4977_v20  ;;  %v5058_v25 = vld [vmem:[#allocation6 + $0x76c] ss:$16 sps:$4 sm:$0xff]   ;;  %v5053_v20 = vld [vmem:[#allocation6 + $0x760] ss:$16 sps:$4 sm:$0xff]  }
 0x3b6   :  { %3358 = vmatprep.subr.bf16.mxu1 %v4980_v26  ;;  %v5056_v26 = vld [vmem:[#allocation6 + $0x768] ss:$16 sps:$4 sm:$0xff]  }
 0x3b8   :  { %3195 = vmatpush1.bf16.msra.mxu0 %v4975_v31  ;;  %v5064_v31 = vld [vmem:[#allocation6 + $0x78c] ss:$16 sps:$4 sm:$0xff]  }
 0x3b9   :  { %3359 = vmatpush1.bf16.msra.mxu1 %v4978_v60  ;;  %3196 = vmatprep.subr.bf16.mxu0 %v4983_v62  ;;  %v5059_v60 = vld [vmem:[#allocation6 + $0x780] ss:$16 sps:$4 sm:$0xff]   ;;  %v5062_v62 = vld [vmem:[#allocation6 + $0x788] ss:$16 sps:$4 sm:$0xff]  }
 0x3ba   :  { %3360 = vmatprep.subr.bf16.mxu1 %v4986_v5  ;;  %v5067_v5 = vld [vmem:[#allocation6 + $0x7a4] ss:$16 sps:$4 sm:$0xff]  }
 0x3bc   :  { %3197 = vmatpush1.bf16.msra.mxu0 %v4981_v33  ;;  %v5070_v33 = vld [vmem:[#allocation6 + $0x7ac] ss:$16 sps:$4 sm:$0xff]  }
 0x3bd   :  { %3361 = vmatpush1.bf16.msra.mxu1 %v4984_v34  ;;  %3207 = vmatprep.subr.bf16.mxu0 %v4989_v28  ;;  %v5065_v34 = vld [vmem:[#allocation6 + $0x7a0] ss:$16 sps:$4 sm:$0xff]   ;;  %v5068_v28 = vld [vmem:[#allocation6 + $0x7a8] ss:$16 sps:$4 sm:$0xff]  }
 0x3be   :  { %3371 = vmatprep.subr.bf16.mxu1 %v4992_v35  ;;  %v5073_v35 = vld [vmem:[#allocation6 + $0x7c4] ss:$16 sps:$4 sm:$0xff]  }
 0x3bf   :  { %3199 = vmatmul.mubr.bf16.vlgmr.msra.gmra.mrb[24].mxu0 %v1522_v16 }
 0x3c0   :  { %3363 = vmatmul.mubr.bf16.vlgmr.msra.gmra.mrb[56].mxu1 %v1522_v16  ;;  %3208 = vmatpush1.bf16.msra.mxu0 %v4987_v14  ;;  %v5071_v14 = vld [vmem:[#allocation6 + $0x7c0] ss:$16 sps:$4 sm:$0xff]   ;;  %v5074_v16 = vld [vmem:[#allocation6 + $0x7c8] ss:$16 sps:$4 sm:$0xff]  }
 0x3c1   :  { %3239 = vmatprep.mubr.bf16.mxu0 %v1525_v37  ;;  %3372 = vmatpush1.bf16.msra.mxu1 %v4990_v36  ;;  %v5079_v36 = vld [vmem:[#allocation6 + $0x7e4] ss:$16 sps:$4 sm:$0xff]  }
 0x3c2   :  { %3403 = vmatprep.mubr.bf16.mxu1 %v1525_v37  ;;  %3209 = vmatprep.subr.bf16.mxu0 %v4995_v49  ;;  %v5082_v49 = vld [vmem:[#allocation6 + $0x7ec] ss:$16 sps:$4 sm:$0xff]   ;;  %v5077_v37 = vld [vmem:[#allocation6 + $0x7e0] ss:$16 sps:$4 sm:$0xff]  }
 0x3c3   :  { %3373 = vmatprep.subr.bf16.mxu1 %v4998_v38  ;;  %v5080_v38 = vld [vmem:[#allocation6 + $0x7e8] ss:$16 sps:$4 sm:$0xff]  }
 0x3c4   :  { %3210 = vmatpush1.bf16.msra.mxu0 %v4993_v17  ;;  %v5085_v17 = vld [vmem:[#allocation8 + $0x4] ss:$8 sps:$4 sm:$0xff]  }
 0x3c5   :  { %3374 = vmatpush1.bf16.msra.mxu1 %v4996_v18  ;;  %3211 = vmatprep.subr.bf16.mxu0 %v5001_v29  ;;  %v5083_v18 = vld [vmem:[#allocation8] ss:$8 sps:$4 sm:$0xff]   ;;  %v1524_v29 = vpack.c.bf16 %v5700_v32, %v5700_v32  ;;  %v5100_v32 = vld [vmem:[#allocation8 + $0x54] ss:$8 sps:$4 sm:$0xff]  }
 0x3c6   :  { %3375 = vmatprep.subr.bf16.mxu1 %v5004_v39  ;;  %v5088_v39 = vld [vmem:[#allocation8 + $0x14] ss:$8 sps:$4 sm:$0xff]  }
 0x3c8   :  { %3212 = vmatpush1.bf16.msra.mxu0 %v4999_v13  ;;  %v5086_v13 = vld [vmem:[#allocation8 + $0x10] ss:$8 sps:$4 sm:$0xff]  }
 0x3c9   :  { %3376 = vmatpush1.bf16.msra.mxu1 %v5002_v40  ;;  %3213 = vmatprep.subr.bf16.mxu0 %v5007_v41  ;;  %v5091_v40 = vld [vmem:[#allocation8 + $0x24] ss:$8 sps:$4 sm:$0xff]   ;;  %v5089_v41 = vld [vmem:[#allocation8 + $0x20] ss:$8 sps:$4 sm:$0xff]  }
 0x3ca   :  { %3377 = vmatprep.subr.bf16.mxu1 %v5010_v42  ;;  %v5094_v42 = vld [vmem:[#allocation8 + $0x34] ss:$8 sps:$4 sm:$0xff]  }
 0x3cc   :  { %3214 = vmatpush1.bf16.msra.mxu0 %v5005_v43  ;;  %v5092_v43 = vld [vmem:[#allocation8 + $0x30] ss:$8 sps:$4 sm:$0xff]  }
 0x3cd   :  { %3378 = vmatpush1.bf16.msra.mxu1 %v5008_v44  ;;  %3215 = vmatprep.subr.bf16.mxu0 %v5013_v45  ;;  %v5097_v44 = vld [vmem:[#allocation8 + $0x44] ss:$8 sps:$4 sm:$0xff]   ;;  %v5095_v45 = vld [vmem:[#allocation8 + $0x40] ss:$8 sps:$4 sm:$0xff]  }
 0x3ce   :  { %3379 = vmatprep.subr.bf16.mxu1 %v5016_v46  ;;  %v5098_v46 = vld [vmem:[#allocation8 + $0x50] ss:$8 sps:$4 sm:$0xff]  }
 0x3d0   :  { %3216 = vmatpush1.bf16.msra.mxu0 %v5011_v47  ;;  %v5103_v47 = vld [vmem:[#allocation8 + $0x64] ss:$8 sps:$4 sm:$0xff]  }
 0x3d1   :  { %3380 = vmatpush1.bf16.msra.mxu1 %v5014_v59  ;;  %3217 = vmatprep.subr.bf16.mxu0 %v5019_v61  ;;  %v5101_v59 = vld [vmem:[#allocation8 + $0x60] ss:$8 sps:$4 sm:$0xff]   ;;  %v5106_v61 = vld [vmem:[#allocation8 + $0x74] ss:$8 sps:$4 sm:$0xff]  }
 0x3d2   :  { %3381 = vmatprep.subr.bf16.mxu1 %v5022_v4  ;;  %v5104_v4 = vld [vmem:[#allocation8 + $0x70] ss:$8 sps:$4 sm:$0xff]  }
 0x3d4   :  { %3218 = vmatpush1.bf16.msra.mxu0 %v5017_v48  ;;  %v5109_v48 = vld [vmem:[#allocation8 + $0x84] ss:$8 sps:$4 sm:$0xff]  }
 0x3d5   :  { %3382 = vmatpush1.bf16.msra.mxu1 %v5020_v50  ;;  %3219 = vmatprep.subr.bf16.mxu0 %v5025_v52  ;;  %v5107_v50 = vld [vmem:[#allocation8 + $0x80] ss:$8 sps:$4 sm:$0xff]   ;;  %v5112_v52 = vld [vmem:[#allocation8 + $0x94] ss:$8 sps:$4 sm:$0xff]  }
 0x3d6   :  { %3383 = vmatprep.subr.bf16.mxu1 %v5028_v53  ;;  %v5110_v53 = vld [vmem:[#allocation8 + $0x90] ss:$8 sps:$4 sm:$0xff]  }
 0x3d8   :  { %3220 = vmatpush1.bf16.msra.mxu0 %v5023_v54  ;;  %v5115_v54 = vld [vmem:[#allocation8 + $0xa4] ss:$8 sps:$4 sm:$0xff]  }
 0x3d9   :  { %3384 = vmatpush1.bf16.msra.mxu1 %v5026_v55  ;;  %3221 = vmatprep.subr.bf16.mxu0 %v5031_v56  ;;  %v5113_v55 = vld [vmem:[#allocation8 + $0xa0] ss:$8 sps:$4 sm:$0xff]   ;;  %v5118_v56 = vld [vmem:[#allocation8 + $0xb4] ss:$8 sps:$4 sm:$0xff]  }
 0x3da   :  { %3385 = vmatprep.subr.bf16.mxu1 %v5034_v57  ;;  %v5116_v57 = vld [vmem:[#allocation8 + $0xb0] ss:$8 sps:$4 sm:$0xff]  }
 0x3dc   :  { %3222 = vmatpush1.bf16.msra.mxu0 %v5029_v63  ;;  %v5121_v63 = vld [vmem:[#allocation8 + $0xc4] ss:$8 sps:$4 sm:$0xff]  }
 0x3dd   :  { %3386 = vmatpush1.bf16.msra.mxu1 %v5032_v0  ;;  %3223 = vmatprep.subr.bf16.mxu0 %v5037_v6  ;;  %v5119_v0 = vld [vmem:[#allocation8 + $0xc0] ss:$8 sps:$4 sm:$0xff]   ;;  %v5124_v6 = vld [vmem:[#allocation8 + $0xd4] ss:$8 sps:$4 sm:$0xff]  }
 0x3de   :  { %3387 = vmatprep.subr.bf16.mxu1 %v5040_v7  ;;  %v5122_v7 = vld [vmem:[#allocation8 + $0xd0] ss:$8 sps:$4 sm:$0xff]  }
 0x3e0   :  { %3224 = vmatpush1.bf16.msra.mxu0 %v5035_v8  ;;  %v5127_v8 = vld [vmem:[#allocation8 + $0xe4] ss:$8 sps:$4 sm:$0xff]  }
 0x3e1   :  { %3388 = vmatpush1.bf16.msra.mxu1 %v5038_v9  ;;  %3225 = vmatprep.subr.bf16.mxu0 %v5043_v10  ;;  %v5125_v9 = vld [vmem:[#allocation8 + $0xe0] ss:$8 sps:$4 sm:$0xff]   ;;  %v5130_v10 = vld [vmem:[#allocation8 + $0xf4] ss:$8 sps:$4 sm:$0xff]  }
 0x3e2   :  { %3389 = vmatprep.subr.bf16.mxu1 %v5046_v11  ;;  %v5128_v11 = vld [vmem:[#allocation8 + $0xf0] ss:$8 sps:$4 sm:$0xff]  }
 0x3e4   :  { %3226 = vmatpush1.bf16.msra.mxu0 %v5041_v12  ;;  %v5133_v12 = vld [vmem:[#allocation8 + $0x104] ss:$8 sps:$4 sm:$0xff]  }
 0x3e5   :  { %3390 = vmatpush1.bf16.msra.mxu1 %v5044_v19  ;;  %3227 = vmatprep.subr.bf16.mxu0 %v5049_v21  ;;  %v5179_v19 = vld [vmem:[#allocation9] ss:$8 sps:$4 sm:$0xff]   ;;  %v5181_v21 = vld [vmem:[#allocation9 + $0x4] ss:$8 sps:$4 sm:$0xff]  }
 0x3e6   :  { %3391 = vmatprep.subr.bf16.mxu1 %v5052_v3  ;;  %v5184_v3 = vld [vmem:[#allocation9 + $0x14] ss:$8 sps:$4 sm:$0xff]  }
 0x3e8   :  { %3228 = vmatpush1.bf16.msra.mxu0 %v5047_v22  ;;  %v5182_v22 = vld [vmem:[#allocation9 + $0x10] ss:$8 sps:$4 sm:$0xff]  }
 0x3e9   :  { %3392 = vmatpush1.bf16.msra.mxu1 %v5050_v23  ;;  %3229 = vmatprep.subr.bf16.mxu0 %v5055_v2  ;;  %v5187_v23 = vld [vmem:[#allocation9 + $0x24] ss:$8 sps:$4 sm:$0xff]   ;;  %v5185_v2 = vld [vmem:[#allocation9 + $0x20] ss:$8 sps:$4 sm:$0xff]  }
 0x3ea   :  { %3393 = vmatprep.subr.bf16.mxu1 %v5058_v25  ;;  %v5190_v25 = vld [vmem:[#allocation9 + $0x34] ss:$8 sps:$4 sm:$0xff]  }
 0x3ec   :  { %3230 = vmatpush1.bf16.msra.mxu0 %v5053_v20  ;;  %v5188_v20 = vld [vmem:[#allocation9 + $0x30] ss:$8 sps:$4 sm:$0xff]  }
 0x3ed   :  { %3394 = vmatpush1.bf16.msra.mxu1 %v5056_v26  ;;  %3231 = vmatprep.subr.bf16.mxu0 %v5061_v27  ;;  %v5193_v26 = vld [vmem:[#allocation9 + $0x44] ss:$8 sps:$4 sm:$0xff]   ;;  %v5191_v27 = vld [vmem:[#allocation9 + $0x40] ss:$8 sps:$4 sm:$0xff]  }
 0x3ee   :  { %3395 = vmatprep.subr.bf16.mxu1 %v5064_v31  ;;  %v5196_v31 = vld [vmem:[#allocation9 + $0x54] ss:$8 sps:$4 sm:$0xff]  }
 0x3f0   :  { %3232 = vmatpush1.bf16.msra.mxu0 %v5059_v60  ;;  %v5194_v60 = vld [vmem:[#allocation9 + $0x50] ss:$8 sps:$4 sm:$0xff]  }
 0x3f1   :  { %3396 = vmatpush1.bf16.msra.mxu1 %v5062_v62  ;;  %3233 = vmatprep.subr.bf16.mxu0 %v5067_v5  ;;  %v5199_v62 = vld [vmem:[#allocation9 + $0x64] ss:$8 sps:$4 sm:$0xff]   ;;  %v5197_v5 = vld [vmem:[#allocation9 + $0x60] ss:$8 sps:$4 sm:$0xff]  }
 0x3f2   :  { %3397 = vmatprep.subr.bf16.mxu1 %v5070_v33  ;;  %v5202_v33 = vld [vmem:[#allocation9 + $0x74] ss:$8 sps:$4 sm:$0xff]  }
 0x3f4   :  { %3234 = vmatpush1.bf16.msra.mxu0 %v5065_v34  ;;  %v5200_v34 = vld [vmem:[#allocation9 + $0x70] ss:$8 sps:$4 sm:$0xff]  }
 0x3f5   :  { %3398 = vmatpush1.bf16.msra.mxu1 %v5068_v28  ;;  %3235 = vmatprep.subr.bf16.mxu0 %v5073_v35  ;;  %v5205_v28 = vld [vmem:[#allocation9 + $0x84] ss:$8 sps:$4 sm:$0xff]   ;;  %v5203_v35 = vld [vmem:[#allocation9 + $0x80] ss:$8 sps:$4 sm:$0xff]  }
 0x3f6   :  { %3399 = vmatprep.subr.bf16.mxu1 %v5076_v51  ;;  %v5208_v51 = vld [vmem:[#allocation9 + $0x94] ss:$8 sps:$4 sm:$0xff]  }
 0x3f8   :  { %3236 = vmatpush1.bf16.msra.mxu0 %v5071_v14  ;;  %v5206_v14 = vld [vmem:[#allocation9 + $0x90] ss:$8 sps:$4 sm:$0xff]  }
 0x3f9   :  { %3400 = vmatpush1.bf16.msra.mxu1 %v5074_v16  ;;  %3237 = vmatprep.subr.bf16.mxu0 %v5079_v36  ;;  %v5211_v16 = vld [vmem:[#allocation9 + $0xa4] ss:$8 sps:$4 sm:$0xff]   ;;  %v5209_v36 = vld [vmem:[#allocation9 + $0xa0] ss:$8 sps:$4 sm:$0xff]  }
 0x3fa   :  { %3401 = vmatprep.subr.bf16.mxu1 %v5082_v49  ;;  %v5214_v49 = vld [vmem:[#allocation9 + $0xb4] ss:$8 sps:$4 sm:$0xff]  }
 0x3fc   :  { %3238 = vmatpush1.bf16.msra.mxu0 %v5077_v37  ;;  %v5212_v37 = vld [vmem:[#allocation9 + $0xb0] ss:$8 sps:$4 sm:$0xff]  }
 0x3fd   :  { %3402 = vmatpush1.bf16.msra.mxu1 %v5080_v38  ;;  %3816 = vmatprep.subr.bf16.mxu0 %v5085_v17  ;;  %v5217_v38 = vld [vmem:[#allocation9 + $0xc4] ss:$8 sps:$4 sm:$0xff]   ;;  %v5215_v17 = vld [vmem:[#allocation9 + $0xc0] ss:$8 sps:$4 sm:$0xff]  }
 0x3fe   :  { %4106 = vmatprep.subr.bf16.mxu1 %v5181_v21  ;;  %v5149_v21 = vld [vmem:[#allocation8 + $0x160] ss:$8 sps:$4 sm:$0xff]  }
 0x3ff   :  { %3240 = vmatmul.mubr.bf16.vlgmr.msra.gmra.mrb[24].mxu0 %v1524_v29 }
 0x400   :  { %3404 = vmatmul.mubr.bf16.vlgmr.msra.gmra.mrb[56].mxu1 %v1524_v29  ;;  %3817 = vmatpush1.bf16.msra.mxu0 %v5083_v18  ;;  %v5220_v18 = vld [vmem:[#allocation9 + $0xd4] ss:$8 sps:$4 sm:$0xff]   ;;  %v5711_v29 = vld [vmem:[%s5756_s8] sm:$0xf] }
 0x401   :  { %3818 = vmatprep.subr.bf16.mxu0 %v5088_v39  ;;  %4107 = vmatpush1.bf16.msra.mxu1 %v5179_v19  ;;  %v5218_v39 = vld [vmem:[#allocation9 + $0xd0] ss:$8 sps:$4 sm:$0xff]   ;;  %v5151_v19 = vld [vmem:[#allocation8 + $0x164] ss:$8 sps:$4 sm:$0xff]  }
 0x402   :  { %4108 = vmatprep.subr.bf16.mxu1 %v5184_v3  ;;  %v5154_v3 = vld [vmem:[#allocation8 + $0x174] ss:$8 sps:$4 sm:$0xff]  }
 0x404   :  { %3819 = vmatpush1.bf16.msra.mxu0 %v5086_v13  ;;  %v1787_v13 = vrot.slane %v5711_v29, %v5615_v58 }
 0x405   :  { %3820 = vmatprep.subr.bf16.mxu0 %v5091_v40  ;;  %4109 = vmatpush1.bf16.msra.mxu1 %v5182_v22  ;;  %v1791_v40 = vrot.slane %v5711_v29, %v5623_v15  ;;  %v5152_v22 = vld [vmem:[#allocation8 + $0x170] ss:$8 sps:$4 sm:$0xff]  }
 0x406   :  { %4110 = vmatprep.subr.bf16.mxu1 %v5187_v23  ;;  %v5157_v23 = vld [vmem:[#allocation8 + $0x184] ss:$8 sps:$4 sm:$0xff]  }
 0x408   :  { %3821 = vmatpush1.bf16.msra.mxu0 %v5089_v41  ;;  %v1799_v41 = vrot.slane %v5711_v29, %v1416_v1  ;;  %v5136_v1 = vld [vmem:[#allocation8 + $0x114] ss:$8 sps:$4 sm:$0xff]  }
 0x409   :  { %3822 = vmatprep.subr.bf16.mxu0 %v5094_v42  ;;  %4111 = vmatpush1.bf16.msra.mxu1 %v5185_v2  ;;  %v5155_v2 = vld [vmem:[#allocation8 + $0x180] ss:$8 sps:$4 sm:$0xff]  }
 0x40a   :  { %4112 = vmatprep.subr.bf16.mxu1 %v5190_v25  ;;  %v5160_v25 = vld [vmem:[#allocation8 + $0x194] ss:$8 sps:$4 sm:$0xff]  }
 0x40c   :  { %3823 = vmatpush1.bf16.msra.mxu0 %v5092_v43 }
 0x40d   :  { %3824 = vmatprep.subr.bf16.mxu0 %v5097_v44  ;;  %4113 = vmatpush1.bf16.msra.mxu1 %v5188_v20  ;;  %v5158_v20 = vld [vmem:[#allocation8 + $0x190] ss:$8 sps:$4 sm:$0xff]  }
 0x40e   :  { %4114 = vmatprep.subr.bf16.mxu1 %v5193_v26  ;;  %v5163_v26 = vld [vmem:[#allocation8 + $0x1a4] ss:$8 sps:$4 sm:$0xff]  }
 0x410   :  { %3825 = vmatpush1.bf16.msra.mxu0 %v5095_v45 }
 0x411   :  { %3826 = vmatprep.subr.bf16.mxu0 %v5100_v32  ;;  %4115 = vmatpush1.bf16.msra.mxu1 %v5191_v27  ;;  %v5161_v27 = vld [vmem:[#allocation8 + $0x1a0] ss:$8 sps:$4 sm:$0xff]  }
 0x412   :  { %4116 = vmatprep.subr.bf16.mxu1 %v5196_v31  ;;  %v5166_v31 = vld [vmem:[#allocation8 + $0x1b4] ss:$8 sps:$4 sm:$0xff]  }
 0x414   :  { %3827 = vmatpush1.bf16.msra.mxu0 %v5098_v46 }
 0x415   :  { %3828 = vmatprep.subr.bf16.mxu0 %v5103_v47  ;;  %4117 = vmatpush1.bf16.msra.mxu1 %v5194_v60  ;;  %v5164_v60 = vld [vmem:[#allocation8 + $0x1b0] ss:$8 sps:$4 sm:$0xff]  }
 0x416   :  { %4118 = vmatprep.subr.bf16.mxu1 %v5199_v62  ;;  %v5169_v62 = vld [vmem:[#allocation8 + $0x1c4] ss:$8 sps:$4 sm:$0xff]  }
 0x418   :  { %3829 = vmatpush1.bf16.msra.mxu0 %v5101_v59 }
 0x419   :  { %3830 = vmatprep.subr.bf16.mxu0 %v5106_v61  ;;  %4119 = vmatpush1.bf16.msra.mxu1 %v5197_v5  ;;  %v5167_v5 = vld [vmem:[#allocation8 + $0x1c0] ss:$8 sps:$4 sm:$0xff]  }
 0x41a   :  { %4120 = vmatprep.subr.bf16.mxu1 %v5202_v33  ;;  %v5172_v33 = vld [vmem:[#allocation8 + $0x1d4] ss:$8 sps:$4 sm:$0xff]  }
 0x41c   :  { %3831 = vmatpush1.bf16.msra.mxu0 %v5104_v4 }
 0x41d   :  { %3832 = vmatprep.subr.bf16.mxu0 %v5109_v48  ;;  %4121 = vmatpush1.bf16.msra.mxu1 %v5200_v34  ;;  %v5170_v34 = vld [vmem:[#allocation8 + $0x1d0] ss:$8 sps:$4 sm:$0xff]  }
 0x41e   :  { %4122 = vmatprep.subr.bf16.mxu1 %v5205_v28  ;;  %v1795_v28 = vrot.slane %v5711_v29, %v1412_v24  ;;  %v5224_v24 = vld [vmem:[#allocation9 + $0xf0] ss:$8 sps:$4 sm:$0xff]  }
 0x420   :  { %3833 = vmatpush1.bf16.msra.mxu0 %v5107_v50 }
 0x421   :  { %3834 = vmatprep.subr.bf16.mxu0 %v5112_v52  ;;  %4123 = vmatpush1.bf16.msra.mxu1 %v5203_v35  ;;  %v5175_v35 = vld [vmem:[#allocation8 + $0x1e4] ss:$8 sps:$4 sm:$0xff]  }
 0x422   :  { %4124 = vmatprep.subr.bf16.mxu1 %v5208_v51  ;;  %v5173_v51 = vld [vmem:[#allocation8 + $0x1e0] ss:$8 sps:$4 sm:$0xff]  }
 0x424   :  { %3835 = vmatpush1.bf16.msra.mxu0 %v5110_v53 }
 0x425   :  { %3836 = vmatprep.subr.bf16.mxu0 %v5115_v54  ;;  %4125 = vmatpush1.bf16.msra.mxu1 %v5206_v14 }
 0x426   :  { %4126 = vmatprep.subr.bf16.mxu1 %v5211_v16  ;;  %v5178_v16 = vld [vmem:[#allocation8 + $0x1f4] ss:$8 sps:$4 sm:$0xff]  }
 0x428   :  { %3837 = vmatpush1.bf16.msra.mxu0 %v5113_v55  ;;  %v5131_v55 = vld [vmem:[#allocation8 + $0x100] ss:$8 sps:$4 sm:$0xff]  }
 0x429   :  { %3838 = vmatprep.subr.bf16.mxu0 %v5118_v56  ;;  %4127 = vmatpush1.bf16.msra.mxu1 %v5209_v36  ;;  %v5176_v36 = vld [vmem:[#allocation8 + $0x1f0] ss:$8 sps:$4 sm:$0xff]  }
 0x42a   :  { %4128 = vmatprep.subr.bf16.mxu1 %v5214_v49 }
 0x42c   :  { %3839 = vmatpush1.bf16.msra.mxu0 %v5116_v57 }
 0x42d   :  { %3840 = vmatprep.subr.bf16.mxu0 %v5121_v63  ;;  %4129 = vmatpush1.bf16.msra.mxu1 %v5212_v37  ;;  %v5134_v63 = vld [vmem:[#allocation8 + $0x110] ss:$8 sps:$4 sm:$0xff]  }
 0x42e   :  { %4130 = vmatprep.subr.bf16.mxu1 %v5217_v38  ;;  %v5223_v38 = vld [vmem:[#allocation9 + $0xe4] ss:$8 sps:$4 sm:$0xff]  }
 0x430   :  { %3841 = vmatpush1.bf16.msra.mxu0 %v5119_v0  ;;  %v5139_v0 = vld [vmem:[#allocation8 + $0x124] ss:$8 sps:$4 sm:$0xff]  }
 0x431   :  { %3842 = vmatprep.subr.bf16.mxu0 %v5124_v6  ;;  %4131 = vmatpush1.bf16.msra.mxu1 %v5215_v17  ;;  %v5137_v6 = vld [vmem:[#allocation8 + $0x120] ss:$8 sps:$4 sm:$0xff]  }
 0x432   :  { %4132 = vmatprep.subr.bf16.mxu1 %v5220_v18  ;;  %v5221_v17 = vld [vmem:[#allocation9 + $0xe0] ss:$8 sps:$4 sm:$0xff]  }
 0x433   :  { %v3484_v18 = vld [vmem:[%s5758_s10] sm:$0x3]  ;;  %s5357_s10 = smov [#allocation11]  }
 0x434   :  { %3843 = vmatpush1.bf16.msra.mxu0 %v5122_v7  ;;  %v5142_v7 = vld [vmem:[#allocation8 + $0x134] ss:$8 sps:$4 sm:$0xff]   ;;  %v3489_v29 = vrot.slane %v3484_v18, %v5615_v58  ;;  %s4165_s1 = sshll.u32 %s5357_s10, 4  ;;  %s4166_s1 = int_to_ptr.vmem [resolvable:$true] %s4165_s1 }
 0x435   :  { %3844 = vmatprep.subr.bf16.mxu0 %v5127_v8  ;;  %4133 = vmatpush1.bf16.msra.mxu1 %v5218_v39  ;;  %v5140_v8 = vld [vmem:[#allocation8 + $0x130] ss:$8 sps:$4 sm:$0xff]   ;;  %v3493_v39 = vrot.slane %v3484_v18, %v5623_v15  ;;  %s5315_s7 = scalar_lea.vmem %s4166_s1, 64  ;;  %p5320_p5 = scmp.lt.s32.totalorder %s4166_s1, %s4166_s1 }
 0x436   :  { %4134 = vmatprep.subr.bf16.mxu1 %v5223_v38  ;;  %p5316_p4 = scmp.ne.s32.totalorder %s4166_s1, %s5315_s7  ;;  %p5321_p6 = scmp.lt.s32.totalorder %s5315_s7, %s5315_s7 }
 0x438   :  { %3845 = vmatpush1.bf16.msra.mxu0 %v5125_v9  ;;  %v5145_v9 = vld [vmem:[#allocation8 + $0x144] ss:$8 sps:$4 sm:$0xff]   ;;  %p5322_p7 = por %p5321_p6, %p5320_p5 }
 0x439   :  { %3846 = vmatprep.subr.bf16.mxu0 %v5130_v10  ;;  %v5143_v10 = vld [vmem:[#allocation8 + $0x140] ss:$8 sps:$4 sm:$0xff]   ;;  %4135 = vmatpush1.bf16.msra.mxu1 %v5221_v17 }
 0x43a   :  { %4136 = vmatprep.subr.bf16.mxu1 %v5226_v30  ;;  %p5323_p8 = pnand %p5322_p7, %p5316_p4 }
 0x43c   :  { %3847 = vmatpush1.bf16.msra.mxu0 %v5128_v11  ;;  %v5148_v11 = vld [vmem:[#allocation8 + $0x154] ss:$8 sps:$4 sm:$0xff]  }
 0x43d   :  { %3857 = vmatprep.subr.bf16.mxu0 %v5133_v12  ;;  %v5146_v12 = vld [vmem:[#allocation8 + $0x150] ss:$8 sps:$4 sm:$0xff]   ;;  %4137 = vmatpush1.bf16.msra.mxu1 %v5224_v24 }
 0x4d2   :  { %v3241_v42 = vpop.f32.mrb[24].mxu0 }
 0x4d3   :  { %v4647_v43 = vadd.f32 %v3241_v42, %v1787_v13  ;;  %v5720_v44 = vpop.f32.mrb[56].mxu1  ;;  %v3243_v45 = vpop.f32.mrb[25].mxu0 }
 0x4d4   :  { %v4648_v32 = vadd.f32 %v3243_v45, %v1791_v40  ;;  %v3407_v46 = vpop.f32.mrb[57].mxu1  ;;  %v3245_v47 = vpop.f32.mrb[26].mxu0  ;;  %v4649_v14 = vadd.f32 %v5720_v44, %v1795_v28 }
 0x4d5   :  { %v3412_v59 = vmax.f32 %v4647_v43, 0.0  ;;  %v4650_v61 = vadd.f32 %v3407_v46, %v1799_v41  ;;  %v3409_v4 = vpop.f32.mrb[58].mxu1  ;;  %v3246_v48 = vpop.f32.mrb[27].mxu0 }
 0x4d6   :  { %v3413_v50 = vmax.f32 %v4648_v32, 0.0  ;;  %v3410_v52 = vpop.f32.mrb[59].mxu1  ;;  %v3414_v49 = vmax.f32 %v4649_v14, 0.0 }
 0x4d7   :  { %v3415_v53 = vmax.f32 %v4650_v61, 0.0  ;;  %v3416_v56 = vpack.c.bf16 %v3412_v59, %v3412_v59  ;;  %v3934_v59 = vld [vmem:[%s5760_s12] sm:$0x3] }
 0x4d8   :  { %v3417_v54 = vpack.c.bf16 %v3413_v50, %v3413_v50  ;;  %v3418_v37 = vpack.c.bf16 %v3414_v49, %v3414_v49  ;;  %v3939_v61 = vrot.slane %v3934_v59, %v5615_v58  ;;  %v3943_v4 = vrot.slane %v3934_v59, %v5623_v15 }
 0x4d9   :  { %v3419_v57 = vpack.c.bf16 %v3415_v53, %v3415_v53 }
 0x4da   :  { %3848 = vmatprep.mubr.bf16.mxu0 %v3417_v54 }
 0x4db   :  { %3849 = vmatmul.mubr.bf16.vlgmr.msra.gmra.mrb[28].mxu0 %v3416_v56 }
 0x4dc   :  { %3858 = vmatpush1.bf16.msra.mxu0 %v5131_v55  ;;  %3889 = vmatprep.mubr.bf16.mxu0 %v3419_v57 }
 0x4dd   :  { %3859 = vmatprep.subr.bf16.mxu0 %v5136_v1 }
 0x4e0   :  { %3860 = vmatpush1.bf16.msra.mxu0 %v5134_v63 }
 0x4e1   :  { %3861 = vmatprep.subr.bf16.mxu0 %v5139_v0 }
 0x4e4   :  { %3862 = vmatpush1.bf16.msra.mxu0 %v5137_v6 }
 0x4e5   :  { %3863 = vmatprep.subr.bf16.mxu0 %v5142_v7 }
 0x4e8   :  { %3864 = vmatpush1.bf16.msra.mxu0 %v5140_v8 }
 0x4e9   :  { %3865 = vmatprep.subr.bf16.mxu0 %v5145_v9 }
 0x4ec   :  { %3866 = vmatpush1.bf16.msra.mxu0 %v5143_v10 }
 0x4ed   :  { %3867 = vmatprep.subr.bf16.mxu0 %v5148_v11 }
 0x4f0   :  { %3868 = vmatpush1.bf16.msra.mxu0 %v5146_v12 }
 0x4f1   :  { %3869 = vmatprep.subr.bf16.mxu0 %v5151_v19 }
 0x4f4   :  { %3870 = vmatpush1.bf16.msra.mxu0 %v5149_v21 }
 0x4f5   :  { %3871 = vmatprep.subr.bf16.mxu0 %v5154_v3 }
 0x4f8   :  { %3872 = vmatpush1.bf16.msra.mxu0 %v5152_v22 }
 0x4f9   :  { %3873 = vmatprep.subr.bf16.mxu0 %v5157_v23 }
 0x4fc   :  { %3874 = vmatpush1.bf16.msra.mxu0 %v5155_v2 }
 0x4fd   :  { %3875 = vmatprep.subr.bf16.mxu0 %v5160_v25 }
 0x500   :  { %3876 = vmatpush1.bf16.msra.mxu0 %v5158_v20 }
 0x501   :  { %3877 = vmatprep.subr.bf16.mxu0 %v5163_v26 }
 0x504   :  { %3878 = vmatpush1.bf16.msra.mxu0 %v5161_v27 }
 0x505   :  { %3879 = vmatprep.subr.bf16.mxu0 %v5166_v31 }
 0x508   :  { %3880 = vmatpush1.bf16.msra.mxu0 %v5164_v60 }
 0x509   :  { %3881 = vmatprep.subr.bf16.mxu0 %v5169_v62 }
 0x50c   :  { %3882 = vmatpush1.bf16.msra.mxu0 %v5167_v5 }
 0x50d   :  { %3883 = vmatprep.subr.bf16.mxu0 %v5172_v33 }
 0x510   :  { %3884 = vmatpush1.bf16.msra.mxu0 %v5170_v34 }
 0x511   :  { %3885 = vmatprep.subr.bf16.mxu0 %v5175_v35 }
 0x514   :  { %3886 = vmatpush1.bf16.msra.mxu0 %v5173_v51 }
 0x515   :  { %3887 = vmatprep.subr.bf16.mxu0 %v5178_v16 }
 0x518   :  { %3888 = vmatpush1.bf16.msra.mxu0 %v5176_v36 }
 0x51b   :  { %3890 = vmatmul.mubr.bf16.vlgmr.msra.gmra.mrb[28].mxu0 %v3418_v37 }
 0x5ee   :  { %v3891_v13 = vpop.f32.mrb[28].mxu0 }
 0x5ef   :  { %v4651_v40 = vadd.f32 %v3891_v13, %v3489_v29  ;;  %v3893_v41 = vpop.f32.mrb[29].mxu0 }
 0x5f0   :  { %v4652_v42 = vadd.f32 %v3893_v41, %v3493_v39  ;;  %v3895_v43 = vpop.f32.mrb[30].mxu0 }
 0x5f1   :  { %v3898_v44 = vmax.f32 %v4651_v40, 0.0  ;;  %v3896_v45 = vpop.f32.mrb[31].mxu0 }
 0x5f2   :  { %v3899_v32 = vmax.f32 %v4652_v42, 0.0 }
 0x5f3   :  { %v3900_v47 = vpack.c.bf16 %v3898_v44, %v3898_v44 }
 0x5f4   :  { %v3901_v46 = vpack.c.bf16 %v3899_v32, %v3899_v32 }
 0x5f6   :  { %4138 = vmatprep.mubr.bf16.mxu1 %v3901_v46 }
 0x5f7   :  { %4139 = vmatmul.mubr.bf16.vlgmr.msra.gmra.mrb[60].mxu1 %v3900_v47 }
 0x6ca   :  { %v4140_v48 = vpop.f32.mrb[60].mxu1 }
 0x6cb   :  { %v4141_v50 = vadd.f32 %v4140_v48, %v3939_v61  ;;  %v4142_v52 = vpop.f32.mrb[61].mxu1 }
 0x6cc   :  { %v4143_v53 = vadd.f32 %v4142_v52, %v3943_v4  ;;  %v4144_v54 = vpop.f32.mrb[62].mxu1 }
 0x6cd   :  { %v4145_v55 = vpop.f32.mrb[63].mxu1 }
 0x6ce   :  { %v4149_v56 = vcombine.low %v4141_v50, %v4143_v53 }
 0x6d0   :  { %4607 = vst.sshfl [vmem:[#allocation11] sm:$0x33 pattern:$0x76325410] %v4149_v56 }
 0x6d1   :  { %5326 = shalt.err (!%p5323_p8)
}
 0x6d2   :  { %s5327_s16 = scalar_lea.hbm %s5761_s13, 64 }
 0x6d3   :  { %p5328_p9 = scmp.ne.s32.totalorder %s5761_s13, %s5327_s16  ;;  %p5331_p10 = scmp.lt.u32.totalorder %s5327_s16, %s5761_s13 }
 0x6d5   :  { %p5333_p11 = pnand %p5331_p10, %p5328_p9 }
 0x6d7   :  { %5336 = shalt.err (!%p5333_p11)
}
 0x6d8   :  { %4168 = dma.vmem_to_hbm [thread:$0]  %s4166_s1, 64, %s5761_s13, [#allocation5]  }
 0x6d9   :  { %5343 = dma.done.wait [#allocation5], 64  }
 0x6da   :  { %5344 = vsyncadd [#allocation5], 4294967232 }
 0x6db   :  { %4172 = vsyncpa [#allocation4], 1 }
 0x6dc   :  { %4173 = vsyncpa [#allocation7], 1 }
 0x6dd   :  { %4174 = vsyncpa [#allocation10], 1 }
 0x6de   :  { %4175 = vsyncpa [#allocation5], 1 }

</bundles_post_ra>
